<compile_context>
chip_gen: v5e
topology: v5e:2x2
jax: 0.10.0
libtpu: 0.0.40
codegen_flags: <defaults>
</compile_context>

<pallas_src>
import jax
import jax.numpy as jnp
from jax.experimental import pallas as pl
from jax.experimental.pallas import tpu as pltpu


def _make_rnn_kernel(T, Bp):
    """Build the wavefront kernel for static (T, padded batch Bp)."""

    def kernel(
        x_ref,                       # (T*Bp, D_in)  time-major, flattened
        w1x_ref, w1h_ref, b1_ref,    # (D_in,128), (128,128), (1,128)
        w2x_ref, w2h_ref, b2_ref,    # (128,128),  (128,128), (1,128)  lane-padded
        w3x_ref, w3h_ref, b3_ref,    # (128,128),  (128,128), (1,128)  lane-padded
        out_ref,                     # (Bp, 128)   last-step hidden of layer 3
        xp1_ref,                     # VMEM scratch: (T*Bp, 128) layer-1 x-path
    ):
        # Layer-1 input path for all T timesteps in ONE 2D MXU matmul (no
        # recurrence dependence); parked in VMEM scratch, read back in aligned
        # (8,128) tiles.
        xp1_ref[...] = (
            jnp.dot(x_ref[...], w1x_ref[...], preferred_element_type=jnp.float32)
            + b1_ref[...]
        )

        w1h = w1h_ref[...]
        w2x = w2x_ref[...]
        w2h = w2h_ref[...]
        b2 = b2_ref[...]
        w3x = w3x_ref[...]
        w3h = w3h_ref[...]
        b3 = b3_ref[...]

        h1 = h2 = h3 = None
        # Fully unrolled static wavefront: diagonal s carries
        #   layer1 @ t=s, layer2 @ t=s-1, layer3 @ t=s-2
        # which are mutually independent within one diagonal.
        for s in range(T + 2):
            n1 = n2 = n3 = None

            if s < T:  # layer 1, time step t = s
                xp = xp1_ref[pl.ds(s * Bp, Bp), :]
                if s == 0:
                    n1 = jnp.tanh(xp)           # h0 == 0: skip hidden matmul
                else:
                    n1 = jnp.tanh(
                        xp + jnp.dot(h1, w1h, preferred_element_type=jnp.float32)
                    )

            if 1 <= s <= T:  # layer 2, time step t = s - 1 (consumes h1 of prev diag)
                xp = jnp.dot(h1, w2x, preferred_element_type=jnp.float32) + b2
                if s == 1:
                    n2 = jnp.tanh(xp)
                else:
                    n2 = jnp.tanh(
                        xp + jnp.dot(h2, w2h, preferred_element_type=jnp.float32)
                    )

            if 2 <= s <= T + 1:  # layer 3, time step t = s - 2 (consumes h2 of prev diag)
                xp = jnp.dot(h2, w3x, preferred_element_type=jnp.float32) + b3
                if s == 2:
                    n3 = jnp.tanh(xp)
                else:
                    n3 = jnp.tanh(
                        xp + jnp.dot(h3, w3h, preferred_element_type=jnp.float32)
                    )

            # Commit after all reads of the previous diagonal's values.
            if n1 is not None:
                h1 = n1
            if n2 is not None:
                h2 = n2
            if n3 is not None:
                h3 = n3

        out_ref[...] = h3

    return kernel


def rnn_forward(x, params):
    """x: (B, T, input_size) float32 -> (B, num_classes) float32."""
    B, T, D_in = x.shape
    (w1x, w1h, b1), (w2x, w2h, b2), (w3x, w3h, b3), (wfc, bfc) = params
    H1, H2, H3 = w1h.shape[0], w2h.shape[0], w3h.shape[0]

    Bp = ((B + 7) // 8) * 8        # pad batch to one sublane tile
    Hp = 128                       # pad H2/H3 to one full lane tile

    # Time-major, batch-padded (zero rows), flattened to 2D so every in-kernel
    # matmul is a plain (rows, Din) @ (Din, H) MXU op; row index = t*Bp + b.
    x_tm = jnp.zeros((T, Bp, D_in), jnp.float32).at[:, :B, :].set(
        jnp.transpose(x, (1, 0, 2))
    )
    x2d = x_tm.reshape(T * Bp, D_in)

    def pad2(w, r, c):
        return jnp.pad(w, ((0, r - w.shape[0]), (0, c - w.shape[1])))

    # Lane-pad layers 2/3 to 128: padded weight columns and bias lanes are zero
    # so padded hidden lanes stay exactly zero (tanh(0) == 0).
    w2x_p = pad2(w2x, H1, Hp)
    w2h_p = pad2(w2h, Hp, Hp)
    b2_p = pad2(b2, 1, Hp)
    w3x_p = pad2(w3x, Hp, Hp)
    w3h_p = pad2(w3h, Hp, Hp)
    b3_p = pad2(b3, 1, Hp)

    h3_last = pl.pallas_call(
        _make_rnn_kernel(T, Bp),
        out_shape=jax.ShapeDtypeStruct((Bp, Hp), jnp.float32),
        scratch_shapes=[
            pltpu.VMEM((T * Bp, H1), jnp.float32),
        ],
    )(x2d, w1x, w1h, b1, w2x_p, w2h_p, b2_p, w3x_p, w3h_p, b3_p)

    # FC head hoisted out of the kernel: a C=1-wide kernel output would force
    # masked partial stores and waste kernel inputs on a 16x1 matmul.
    return h3_last[:B, :H3] @ wfc + bfc


def init_params(key, input_size, hidden_size=128, num_classes=1):
    """Deterministic PyTorch-style init (uniform +/- 1/sqrt(H)).

    Each RNN layer is returned as (W_ih^T, W_hh^T, b_ih + b_hh); the Linear
    layer as (W^T, b) — i.e. already transposed for right-multiplication.
    """
    sizes = [(input_size, hidden_size), (hidden_size, 32), (32, 16)]
    params = []
    for d_in, h in sizes:
        key, k1, k2, k3, k4 = jax.random.split(key, 5)
        bound = 1.0 / jnp.sqrt(h)
        w_ih = jax.random.uniform(k1, (h, d_in), jnp.float32, -bound, bound)
        w_hh = jax.random.uniform(k2, (h, h), jnp.float32, -bound, bound)
        b_ih = jax.random.uniform(k3, (h,), jnp.float32, -bound, bound)
        b_hh = jax.random.uniform(k4, (h,), jnp.float32, -bound, bound)
        params.append((w_ih.T, w_hh.T, (b_ih + b_hh).reshape(1, h)))
    key, k1, k2 = jax.random.split(key, 3)
    bound = 1.0 / jnp.sqrt(16)
    w_fc = jax.random.uniform(k1, (num_classes, 16), jnp.float32, -bound, bound)
    b_fc = jax.random.uniform(k2, (num_classes,), jnp.float32, -bound, bound)
    params.append((w_fc.T, b_fc.reshape(1, num_classes)))
    return tuple(params)


def rnn_forward_ref(x, params):
    """Pure-JAX reference (lax.scan) for correctness checking."""
    (w1x, w1h, b1), (w2x, w2h, b2), (w3x, w3h, b3), (wfc, bfc) = params
    B = x.shape[0]

    def run_layer(seq, wx, wh, b):
        h0 = jnp.zeros((B, wh.shape[0]), jnp.float32)

        def step(h, x_t):
            h = jnp.tanh(x_t @ wx + h @ wh + b)
            return h, h

        _, ys = jax.lax.scan(step, h0, jnp.transpose(seq, (1, 0, 2)))
        return jnp.transpose(ys, (1, 0, 2))

    out = run_layer(x, w1x, w1h, b1)
    out = run_layer(out, w2x, w2h, b2)
    out = run_layer(out, w3x, w3h, b3)
    return out[:, -1, :] @ wfc + bfc


if __name__ == "__main__":
    B, T, input_size = 2, 8, 4
    hidden_size, num_classes = 128, 1

    key = jax.random.PRNGKey(0)
    key, kx = jax.random.split(key)
    x = jax.random.normal(kx, (B, T, input_size), jnp.float32)
    params = init_params(key, input_size, hidden_size, num_classes)

    out = jax.block_until_ready(jax.jit(rnn_forward)(x, params))

    ref = rnn_forward_ref(x, params)
    assert out.shape == (B, num_classes), out.shape
    assert jnp.allclose(out, ref, rtol=1e-3, atol=1e-3), (out, ref)

    print("KERNEL_OK")
</pallas_src>

<mosaic_0001>
module attributes {stable_mosaic.version = 11 : i64} {
  func.func @kernel(%arg0: memref<64x4xf32, #tpu.memory_space<vmem>>, %arg1: memref<4x128xf32, #tpu.memory_space<vmem>>, %arg2: memref<128x128xf32, #tpu.memory_space<vmem>>, %arg3: memref<1x128xf32, #tpu.memory_space<vmem>>, %arg4: memref<128x128xf32, #tpu.memory_space<vmem>>, %arg5: memref<128x128xf32, #tpu.memory_space<vmem>>, %arg6: memref<1x128xf32, #tpu.memory_space<vmem>>, %arg7: memref<128x128xf32, #tpu.memory_space<vmem>>, %arg8: memref<128x128xf32, #tpu.memory_space<vmem>>, %arg9: memref<1x128xf32, #tpu.memory_space<vmem>>, %arg10: memref<8x128xf32, #tpu.memory_space<vmem>>, %arg11: memref<64x128xf32, #tpu.memory_space<vmem>>) attributes {dimension_semantics = [], scalar_prefetch = 0 : i64, scratch_operands = 1 : i64, tpu.core_type = #tpu.core_type<tc>} {
    %c0 = arith.constant 0 : index
    %c0_0 = arith.constant 0 : index
    %0 = vector.load %arg0[%c0, %c0_0] : memref<64x4xf32, #tpu.memory_space<vmem>>, vector<64x4xf32>
    %c0_1 = arith.constant 0 : index
    %c0_2 = arith.constant 0 : index
    %1 = vector.load %arg1[%c0_1, %c0_2] : memref<4x128xf32, #tpu.memory_space<vmem>>, vector<4x128xf32>
    %cst = arith.constant dense<0.000000e+00> : vector<64x128xf32>
    %2 = tpu.matmul %0, %1, %cst {dimension_numbers = #tpu.dot_dimension_numbers<[1], [0], [0], [1], [0, 0, 1, 1], [], []>} : vector<64x4xf32>, vector<4x128xf32>, vector<64x128xf32> -> vector<64x128xf32>
    %c0_3 = arith.constant 0 : index
    %c0_4 = arith.constant 0 : index
    %3 = vector.load %arg3[%c0_3, %c0_4] : memref<1x128xf32, #tpu.memory_space<vmem>>, vector<1x128xf32>
    %4 = vector.broadcast %3 : vector<1x128xf32> to vector<64x128xf32>
    %5 = arith.addf %2, %4 : vector<64x128xf32>
    %c0_5 = arith.constant 0 : index
    %c0_6 = arith.constant 0 : index
    %6 = vector.load %arg11[%c0_5, %c0_6] : memref<64x128xf32, #tpu.memory_space<vmem>>, vector<64x128xf32>
    tpu.vector_store %arg11[%c0_5, %c0_6], %5 {strides = array<i32>} : memref<64x128xf32, #tpu.memory_space<vmem>>, vector<64x128xf32>,
    %c0_7 = arith.constant 0 : index
    %c0_8 = arith.constant 0 : index
    %7 = vector.load %arg2[%c0_7, %c0_8] : memref<128x128xf32, #tpu.memory_space<vmem>>, vector<128x128xf32>
    %c0_9 = arith.constant 0 : index
    %c0_10 = arith.constant 0 : index
    %8 = vector.load %arg4[%c0_9, %c0_10] : memref<128x128xf32, #tpu.memory_space<vmem>>, vector<128x128xf32>
    %c0_11 = arith.constant 0 : index
    %c0_12 = arith.constant 0 : index
    %9 = vector.load %arg5[%c0_11, %c0_12] : memref<128x128xf32, #tpu.memory_space<vmem>>, vector<128x128xf32>
    %c0_13 = arith.constant 0 : index
    %c0_14 = arith.constant 0 : index
    %10 = vector.load %arg6[%c0_13, %c0_14] : memref<1x128xf32, #tpu.memory_space<vmem>>, vector<1x128xf32>
    %c0_15 = arith.constant 0 : index
    %c0_16 = arith.constant 0 : index
    %11 = vector.load %arg7[%c0_15, %c0_16] : memref<128x128xf32, #tpu.memory_space<vmem>>, vector<128x128xf32>
    %c0_17 = arith.constant 0 : index
    %c0_18 = arith.constant 0 : index
    %12 = vector.load %arg8[%c0_17, %c0_18] : memref<128x128xf32, #tpu.memory_space<vmem>>, vector<128x128xf32>
    %c0_19 = arith.constant 0 : index
    %c0_20 = arith.constant 0 : index
    %13 = vector.load %arg9[%c0_19, %c0_20] : memref<1x128xf32, #tpu.memory_space<vmem>>, vector<1x128xf32>
    %c0_21 = arith.constant 0 : index
    %c0_22 = arith.constant 0 : index
    %14 = vector.load %arg11[%c0_21, %c0_22] : memref<64x128xf32, #tpu.memory_space<vmem>>, vector<8x128xf32>
    %15 = math.tanh %14 : vector<8x128xf32>
    %c8 = arith.constant 8 : index
    %c0_23 = arith.constant 0 : index
    %16 = vector.load %arg11[%c8, %c0_23] : memref<64x128xf32, #tpu.memory_space<vmem>>, vector<8x128xf32>
    %cst_24 = arith.constant dense<0.000000e+00> : vector<8x128xf32>
    %17 = tpu.matmul %15, %7, %cst_24 {dimension_numbers = #tpu.dot_dimension_numbers<[1], [0], [0], [1], [0, 0, 1, 1], [], []>} : vector<8x128xf32>, vector<128x128xf32>, vector<8x128xf32> -> vector<8x128xf32>
    %18 = arith.addf %16, %17 : vector<8x128xf32>
    %19 = math.tanh %18 : vector<8x128xf32>
    %cst_25 = arith.constant dense<0.000000e+00> : vector<8x128xf32>
    %20 = tpu.matmul %15, %8, %cst_25 {dimension_numbers = #tpu.dot_dimension_numbers<[1], [0], [0], [1], [0, 0, 1, 1], [], []>} : vector<8x128xf32>, vector<128x128xf32>, vector<8x128xf32> -> vector<8x128xf32>
    %21 = vector.broadcast %10 : vector<1x128xf32> to vector<8x128xf32>
    %22 = arith.addf %20, %21 : vector<8x128xf32>
    %23 = math.tanh %22 : vector<8x128xf32>
    %c16 = arith.constant 16 : index
    %c0_26 = arith.constant 0 : index
    %24 = vector.load %arg11[%c16, %c0_26] : memref<64x128xf32, #tpu.memory_space<vmem>>, vector<8x128xf32>
    %cst_27 = arith.constant dense<0.000000e+00> : vector<8x128xf32>
    %25 = tpu.matmul %19, %7, %cst_27 {dimension_numbers = #tpu.dot_dimension_numbers<[1], [0], [0], [1], [0, 0, 1, 1], [], []>} : vector<8x128xf32>, vector<128x128xf32>, vector<8x128xf32> -> vector<8x128xf32>
    %26 = arith.addf %24, %25 : vector<8x128xf32>
    %27 = math.tanh %26 : vector<8x128xf32>
    %cst_28 = arith.constant dense<0.000000e+00> : vector<8x128xf32>
    %28 = tpu.matmul %19, %8, %cst_28 {dimension_numbers = #tpu.dot_dimension_numbers<[1], [0], [0], [1], [0, 0, 1, 1], [], []>} : vector<8x128xf32>, vector<128x128xf32>, vector<8x128xf32> -> vector<8x128xf32>
    %29 = vector.broadcast %10 : vector<1x128xf32> to vector<8x128xf32>
    %30 = arith.addf %28, %29 : vector<8x128xf32>
    %cst_29 = arith.constant dense<0.000000e+00> : vector<8x128xf32>
    %31 = tpu.matmul %23, %9, %cst_29 {dimension_numbers = #tpu.dot_dimension_numbers<[1], [0], [0], [1], [0, 0, 1, 1], [], []>} : vector<8x128xf32>, vector<128x128xf32>, vector<8x128xf32> -> vector<8x128xf32>
    %32 = arith.addf %30, %31 : vector<8x128xf32>
    %33 = math.tanh %32 : vector<8x128xf32>
    %cst_30 = arith.constant dense<0.000000e+00> : vector<8x128xf32>
    %34 = tpu.matmul %23, %11, %cst_30 {dimension_numbers = #tpu.dot_dimension_numbers<[1], [0], [0], [1], [0, 0, 1, 1], [], []>} : vector<8x128xf32>, vector<128x128xf32>, vector<8x128xf32> -> vector<8x128xf32>
    %35 = vector.broadcast %13 : vector<1x128xf32> to vector<8x128xf32>
    %36 = arith.addf %34, %35 : vector<8x128xf32>
    %37 = math.tanh %36 : vector<8x128xf32>
    %c24 = arith.constant 24 : index
    %c0_31 = arith.constant 0 : index
    %38 = vector.load %arg11[%c24, %c0_31] : memref<64x128xf32, #tpu.memory_space<vmem>>, vector<8x128xf32>
    %cst_32 = arith.constant dense<0.000000e+00> : vector<8x128xf32>
    %39 = tpu.matmul %27, %7, %cst_32 {dimension_numbers = #tpu.dot_dimension_numbers<[1], [0], [0], [1], [0, 0, 1, 1], [], []>} : vector<8x128xf32>, vector<128x128xf32>, vector<8x128xf32> -> vector<8x128xf32>
    %40 = arith.addf %38, %39 : vector<8x128xf32>
    %41 = math.tanh %40 : vector<8x128xf32>
    %cst_33 = arith.constant dense<0.000000e+00> : vector<8x128xf32>
    %42 = tpu.matmul %27, %8, %cst_33 {dimension_numbers = #tpu.dot_dimension_numbers<[1], [0], [0], [1], [0, 0, 1, 1], [], []>} : vector<8x128xf32>, vector<128x128xf32>, vector<8x128xf32> -> vector<8x128xf32>
    %43 = vector.broadcast %10 : vector<1x128xf32> to vector<8x128xf32>
    %44 = arith.addf %42, %43 : vector<8x128xf32>
    %cst_34 = arith.constant dense<0.000000e+00> : vector<8x128xf32>
    %45 = tpu.matmul %33, %9, %cst_34 {dimension_numbers = #tpu.dot_dimension_numbers<[1], [0], [0], [1], [0, 0, 1, 1], [], []>} : vector<8x128xf32>, vector<128x128xf32>, vector<8x128xf32> -> vector<8x128xf32>
    %46 = arith.addf %44, %45 : vector<8x128xf32>
    %47 = math.tanh %46 : vector<8x128xf32>
    %cst_35 = arith.constant dense<0.000000e+00> : vector<8x128xf32>
    %48 = tpu.matmul %33, %11, %cst_35 {dimension_numbers = #tpu.dot_dimension_numbers<[1], [0], [0], [1], [0, 0, 1, 1], [], []>} : vector<8x128xf32>, vector<128x128xf32>, vector<8x128xf32> -> vector<8x128xf32>
    %49 = vector.broadcast %13 : vector<1x128xf32> to vector<8x128xf32>
    %50 = arith.addf %48, %49 : vector<8x128xf32>
    %cst_36 = arith.constant dense<0.000000e+00> : vector<8x128xf32>
    %51 = tpu.matmul %37, %12, %cst_36 {dimension_numbers = #tpu.dot_dimension_numbers<[1], [0], [0], [1], [0, 0, 1, 1], [], []>} : vector<8x128xf32>, vector<128x128xf32>, vector<8x128xf32> -> vector<8x128xf32>
    %52 = arith.addf %50, %51 : vector<8x128xf32>
    %53 = math.tanh %52 : vector<8x128xf32>
    %c32 = arith.constant 32 : index
    %c0_37 = arith.constant 0 : index
    %54 = vector.load %arg11[%c32, %c0_37] : memref<64x128xf32, #tpu.memory_space<vmem>>, vector<8x128xf32>
    %cst_38 = arith.constant dense<0.000000e+00> : vector<8x128xf32>
    %55 = tpu.matmul %41, %7, %cst_38 {dimension_numbers = #tpu.dot_dimension_numbers<[1], [0], [0], [1], [0, 0, 1, 1], [], []>} : vector<8x128xf32>, vector<128x128xf32>, vector<8x128xf32> -> vector<8x128xf32>
    %56 = arith.addf %54, %55 : vector<8x128xf32>
    %57 = math.tanh %56 : vector<8x128xf32>
    %cst_39 = arith.constant dense<0.000000e+00> : vector<8x128xf32>
    %58 = tpu.matmul %41, %8, %cst_39 {dimension_numbers = #tpu.dot_dimension_numbers<[1], [0], [0], [1], [0, 0, 1, 1], [], []>} : vector<8x128xf32>, vector<128x128xf32>, vector<8x128xf32> -> vector<8x128xf32>
    %59 = vector.broadcast %10 : vector<1x128xf32> to vector<8x128xf32>
    %60 = arith.addf %58, %59 : vector<8x128xf32>
    %cst_40 = arith.constant dense<0.000000e+00> : vector<8x128xf32>
    %61 = tpu.matmul %47, %9, %cst_40 {dimension_numbers = #tpu.dot_dimension_numbers<[1], [0], [0], [1], [0, 0, 1, 1], [], []>} : vector<8x128xf32>, vector<128x128xf32>, vector<8x128xf32> -> vector<8x128xf32>
    %62 = arith.addf %60, %61 : vector<8x128xf32>
    %63 = math.tanh %62 : vector<8x128xf32>
    %cst_41 = arith.constant dense<0.000000e+00> : vector<8x128xf32>
    %64 = tpu.matmul %47, %11, %cst_41 {dimension_numbers = #tpu.dot_dimension_numbers<[1], [0], [0], [1], [0, 0, 1, 1], [], []>} : vector<8x128xf32>, vector<128x128xf32>, vector<8x128xf32> -> vector<8x128xf32>
    %65 = vector.broadcast %13 : vector<1x128xf32> to vector<8x128xf32>
    %66 = arith.addf %64, %65 : vector<8x128xf32>
    %cst_42 = arith.constant dense<0.000000e+00> : vector<8x128xf32>
    %67 = tpu.matmul %53, %12, %cst_42 {dimension_numbers = #tpu.dot_dimension_numbers<[1], [0], [0], [1], [0, 0, 1, 1], [], []>} : vector<8x128xf32>, vector<128x128xf32>, vector<8x128xf32> -> vector<8x128xf32>
    %68 = arith.addf %66, %67 : vector<8x128xf32>
    %69 = math.tanh %68 : vector<8x128xf32>
    %c40 = arith.constant 40 : index
    %c0_43 = arith.constant 0 : index
    %70 = vector.load %arg11[%c40, %c0_43] : memref<64x128xf32, #tpu.memory_space<vmem>>, vector<8x128xf32>
    %cst_44 = arith.constant dense<0.000000e+00> : vector<8x128xf32>
    %71 = tpu.matmul %57, %7, %cst_44 {dimension_numbers = #tpu.dot_dimension_numbers<[1], [0], [0], [1], [0, 0, 1, 1], [], []>} : vector<8x128xf32>, vector<128x128xf32>, vector<8x128xf32> -> vector<8x128xf32>
    %72 = arith.addf %70, %71 : vector<8x128xf32>
    %73 = math.tanh %72 : vector<8x128xf32>
    %cst_45 = arith.constant dense<0.000000e+00> : vector<8x128xf32>
    %74 = tpu.matmul %57, %8, %cst_45 {dimension_numbers = #tpu.dot_dimension_numbers<[1], [0], [0], [1], [0, 0, 1, 1], [], []>} : vector<8x128xf32>, vector<128x128xf32>, vector<8x128xf32> -> vector<8x128xf32>
    %75 = vector.broadcast %10 : vector<1x128xf32> to vector<8x128xf32>
    %76 = arith.addf %74, %75 : vector<8x128xf32>
    %cst_46 = arith.constant dense<0.000000e+00> : vector<8x128xf32>
    %77 = tpu.matmul %63, %9, %cst_46 {dimension_numbers = #tpu.dot_dimension_numbers<[1], [0], [0], [1], [0, 0, 1, 1], [], []>} : vector<8x128xf32>, vector<128x128xf32>, vector<8x128xf32> -> vector<8x128xf32>
    %78 = arith.addf %76, %77 : vector<8x128xf32>
    %79 = math.tanh %78 : vector<8x128xf32>
    %cst_47 = arith.constant dense<0.000000e+00> : vector<8x128xf32>
    %80 = tpu.matmul %63, %11, %cst_47 {dimension_numbers = #tpu.dot_dimension_numbers<[1], [0], [0], [1], [0, 0, 1, 1], [], []>} : vector<8x128xf32>, vector<128x128xf32>, vector<8x128xf32> -> vector<8x128xf32>
    %81 = vector.broadcast %13 : vector<1x128xf32> to vector<8x128xf32>
    %82 = arith.addf %80, %81 : vector<8x128xf32>
    %cst_48 = arith.constant dense<0.000000e+00> : vector<8x128xf32>
    %83 = tpu.matmul %69, %12, %cst_48 {dimension_numbers = #tpu.dot_dimension_numbers<[1], [0], [0], [1], [0, 0, 1, 1], [], []>} : vector<8x128xf32>, vector<128x128xf32>, vector<8x128xf32> -> vector<8x128xf32>
    %84 = arith.addf %82, %83 : vector<8x128xf32>
    %85 = math.tanh %84 : vector<8x128xf32>
    %c48 = arith.constant 48 : index
    %c0_49 = arith.constant 0 : index
    %86 = vector.load %arg11[%c48, %c0_49] : memref<64x128xf32, #tpu.memory_space<vmem>>, vector<8x128xf32>
    %cst_50 = arith.constant dense<0.000000e+00> : vector<8x128xf32>
    %87 = tpu.matmul %73, %7, %cst_50 {dimension_numbers = #tpu.dot_dimension_numbers<[1], [0], [0], [1], [0, 0, 1, 1], [], []>} : vector<8x128xf32>, vector<128x128xf32>, vector<8x128xf32> -> vector<8x128xf32>
    %88 = arith.addf %86, %87 : vector<8x128xf32>
    %89 = math.tanh %88 : vector<8x128xf32>
    %cst_51 = arith.constant dense<0.000000e+00> : vector<8x128xf32>
    %90 = tpu.matmul %73, %8, %cst_51 {dimension_numbers = #tpu.dot_dimension_numbers<[1], [0], [0], [1], [0, 0, 1, 1], [], []>} : vector<8x128xf32>, vector<128x128xf32>, vector<8x128xf32> -> vector<8x128xf32>
    %91 = vector.broadcast %10 : vector<1x128xf32> to vector<8x128xf32>
    %92 = arith.addf %90, %91 : vector<8x128xf32>
    %cst_52 = arith.constant dense<0.000000e+00> : vector<8x128xf32>
    %93 = tpu.matmul %79, %9, %cst_52 {dimension_numbers = #tpu.dot_dimension_numbers<[1], [0], [0], [1], [0, 0, 1, 1], [], []>} : vector<8x128xf32>, vector<128x128xf32>, vector<8x128xf32> -> vector<8x128xf32>
    %94 = arith.addf %92, %93 : vector<8x128xf32>
    %95 = math.tanh %94 : vector<8x128xf32>
    %cst_53 = arith.constant dense<0.000000e+00> : vector<8x128xf32>
    %96 = tpu.matmul %79, %11, %cst_53 {dimension_numbers = #tpu.dot_dimension_numbers<[1], [0], [0], [1], [0, 0, 1, 1], [], []>} : vector<8x128xf32>, vector<128x128xf32>, vector<8x128xf32> -> vector<8x128xf32>
    %97 = vector.broadcast %13 : vector<1x128xf32> to vector<8x128xf32>
    %98 = arith.addf %96, %97 : vector<8x128xf32>
    %cst_54 = arith.constant dense<0.000000e+00> : vector<8x128xf32>
    %99 = tpu.matmul %85, %12, %cst_54 {dimension_numbers = #tpu.dot_dimension_numbers<[1], [0], [0], [1], [0, 0, 1, 1], [], []>} : vector<8x128xf32>, vector<128x128xf32>, vector<8x128xf32> -> vector<8x128xf32>
    %100 = arith.addf %98, %99 : vector<8x128xf32>
    %101 = math.tanh %100 : vector<8x128xf32>
    %c56 = arith.constant 56 : index
    %c0_55 = arith.constant 0 : index
    %102 = vector.load %arg11[%c56, %c0_55] : memref<64x128xf32, #tpu.memory_space<vmem>>, vector<8x128xf32>
    %cst_56 = arith.constant dense<0.000000e+00> : vector<8x128xf32>
    %103 = tpu.matmul %89, %7, %cst_56 {dimension_numbers = #tpu.dot_dimension_numbers<[1], [0], [0], [1], [0, 0, 1, 1], [], []>} : vector<8x128xf32>, vector<128x128xf32>, vector<8x128xf32> -> vector<8x128xf32>
    %104 = arith.addf %102, %103 : vector<8x128xf32>
    %105 = math.tanh %104 : vector<8x128xf32>
    %cst_57 = arith.constant dense<0.000000e+00> : vector<8x128xf32>
    %106 = tpu.matmul %89, %8, %cst_57 {dimension_numbers = #tpu.dot_dimension_numbers<[1], [0], [0], [1], [0, 0, 1, 1], [], []>} : vector<8x128xf32>, vector<128x128xf32>, vector<8x128xf32> -> vector<8x128xf32>
    %107 = vector.broadcast %10 : vector<1x128xf32> to vector<8x128xf32>
    %108 = arith.addf %106, %107 : vector<8x128xf32>
    %cst_58 = arith.constant dense<0.000000e+00> : vector<8x128xf32>
    %109 = tpu.matmul %95, %9, %cst_58 {dimension_numbers = #tpu.dot_dimension_numbers<[1], [0], [0], [1], [0, 0, 1, 1], [], []>} : vector<8x128xf32>, vector<128x128xf32>, vector<8x128xf32> -> vector<8x128xf32>
    %110 = arith.addf %108, %109 : vector<8x128xf32>
    %111 = math.tanh %110 : vector<8x128xf32>
    %cst_59 = arith.constant dense<0.000000e+00> : vector<8x128xf32>
    %112 = tpu.matmul %95, %11, %cst_59 {dimension_numbers = #tpu.dot_dimension_numbers<[1], [0], [0], [1], [0, 0, 1, 1], [], []>} : vector<8x128xf32>, vector<128x128xf32>, vector<8x128xf32> -> vector<8x128xf32>
    %113 = vector.broadcast %13 : vector<1x128xf32> to vector<8x128xf32>
    %114 = arith.addf %112, %113 : vector<8x128xf32>
    %cst_60 = arith.constant dense<0.000000e+00> : vector<8x128xf32>
    %115 = tpu.matmul %101, %12, %cst_60 {dimension_numbers = #tpu.dot_dimension_numbers<[1], [0], [0], [1], [0, 0, 1, 1], [], []>} : vector<8x128xf32>, vector<128x128xf32>, vector<8x128xf32> -> vector<8x128xf32>
    %116 = arith.addf %114, %115 : vector<8x128xf32>
    %117 = math.tanh %116 : vector<8x128xf32>
    %cst_61 = arith.constant dense<0.000000e+00> : vector<8x128xf32>
    %118 = tpu.matmul %105, %8, %cst_61 {dimension_numbers = #tpu.dot_dimension_numbers<[1], [0], [0], [1], [0, 0, 1, 1], [], []>} : vector<8x128xf32>, vector<128x128xf32>, vector<8x128xf32> -> vector<8x128xf32>
    %119 = vector.broadcast %10 : vector<1x128xf32> to vector<8x128xf32>
    %120 = arith.addf %118, %119 : vector<8x128xf32>
    %cst_62 = arith.constant dense<0.000000e+00> : vector<8x128xf32>
    %121 = tpu.matmul %111, %9, %cst_62 {dimension_numbers = #tpu.dot_dimension_numbers<[1], [0], [0], [1], [0, 0, 1, 1], [], []>} : vector<8x128xf32>, vector<128x128xf32>, vector<8x128xf32> -> vector<8x128xf32>
    %122 = arith.addf %120, %121 : vector<8x128xf32>
    %123 = math.tanh %122 : vector<8x128xf32>
    %cst_63 = arith.constant dense<0.000000e+00> : vector<8x128xf32>
    %124 = tpu.matmul %111, %11, %cst_63 {dimension_numbers = #tpu.dot_dimension_numbers<[1], [0], [0], [1], [0, 0, 1, 1], [], []>} : vector<8x128xf32>, vector<128x128xf32>, vector<8x128xf32> -> vector<8x128xf32>
    %125 = vector.broadcast %13 : vector<1x128xf32> to vector<8x128xf32>
    %126 = arith.addf %124, %125 : vector<8x128xf32>
    %cst_64 = arith.constant dense<0.000000e+00> : vector<8x128xf32>
    %127 = tpu.matmul %117, %12, %cst_64 {dimension_numbers = #tpu.dot_dimension_numbers<[1], [0], [0], [1], [0, 0, 1, 1], [], []>} : vector<8x128xf32>, vector<128x128xf32>, vector<8x128xf32> -> vector<8x128xf32>
    %128 = arith.addf %126, %127 : vector<8x128xf32>
    %129 = math.tanh %128 : vector<8x128xf32>
    %cst_65 = arith.constant dense<0.000000e+00> : vector<8x128xf32>
    %130 = tpu.matmul %123, %11, %cst_65 {dimension_numbers = #tpu.dot_dimension_numbers<[1], [0], [0], [1], [0, 0, 1, 1], [], []>} : vector<8x128xf32>, vector<128x128xf32>, vector<8x128xf32> -> vector<8x128xf32>
    %131 = vector.broadcast %13 : vector<1x128xf32> to vector<8x128xf32>
    %132 = arith.addf %130, %131 : vector<8x128xf32>
    %cst_66 = arith.constant dense<0.000000e+00> : vector<8x128xf32>
    %133 = tpu.matmul %129, %12, %cst_66 {dimension_numbers = #tpu.dot_dimension_numbers<[1], [0], [0], [1], [0, 0, 1, 1], [], []>} : vector<8x128xf32>, vector<128x128xf32>, vector<8x128xf32> -> vector<8x128xf32>
    %134 = arith.addf %132, %133 : vector<8x128xf32>
    %135 = math.tanh %134 : vector<8x128xf32>
    %c0_67 = arith.constant 0 : index
    %c0_68 = arith.constant 0 : index
    %136 = vector.load %arg10[%c0_67, %c0_68] : memref<8x128xf32, #tpu.memory_space<vmem>>, vector<8x128xf32>
    tpu.vector_store %arg10[%c0_67, %c0_68], %135 {strides = array<i32>} : memref<8x128xf32, #tpu.memory_space<vmem>>, vector<8x128xf32>,
    return
  }
}

</mosaic_0001>

<bundles_post_ra>
// kernel: rnn_forward.1
= control target key start
LH: loop header
LB: loop body
LE: loop exit
PB: predicated region body
PF: predicated region fallthrough
CT: control target
= control target key end

     0   :  { %vm73_vm0 = vcmask 1043456   ;;  %vm48_vm1 = vcmask 31744   ;;  %s2540_s1 = inlined_call_operand.vmem [shape: f32[4,128], index: 1, kind: input, shape index: {}]   ;;  %s2541_s0 = inlined_call_operand.vmem [shape: f32[64,4], index: 0, kind: input, shape index: {}]   ;;  %s2542_s2 = inlined_call_operand.vmem [shape: f32[128,128], index: 2, kind: input, shape index: {}]   ;;  %s2543_s4 = inlined_call_operand.vmem [shape: f32[128,128], index: 4, kind: input, shape index: {}]   ;;  %s2544_s3 = inlined_call_operand.vmem [shape: f32[1,128], index: 3, kind: input, shape index: {}]   ;;  %s2545_s5 = inlined_call_operand.vmem [shape: f32[128,128], index: 5, kind: input, shape index: {}]   ;;  %s2546_s7 = inlined_call_operand.vmem [shape: f32[128,128], index: 7, kind: input, shape index: {}]   ;;  %s2547_s6 = inlined_call_operand.vmem [shape: f32[1,128], index: 6, kind: input, shape index: {}]   ;;  %s2548_s8 = inlined_call_operand.vmem [shape: f32[128,128], index: 8, kind: input, shape index: {}]   ;;  %s2549_s9 = inlined_call_operand.vmem [shape: f32[1,128], index: 9, kind: input, shape index: {}]   ;;  %s2550_s10 = inlined_call_operand.vmem [shape: f32[8,128], index: 10, kind: output, shape index: {}]  }
   0x1   :  { %v43_v0 = vld [vmem:[%s2540_s1] sm:$0xf]  ;;  %v1207_v2 = vld [vmem:[%s2542_s2 + $0x78] sm:$0xff]  ;;  %v1218_v4 = vld [vmem:[%s2542_s2 + $0x70] sm:$0xff] }
   0x2   :  { %v35_v1 = vld [vmem:[%s2541_s0] sm:$0xff]  ;;  %1012 = vmatpush.msk.msra.mxu0 %vm73_vm0, %v43_v0  ;;  %211 = vmatpush.msra.mxu1 %v1207_v2  ;;  %v1213_v3 = vld [vmem:[%s2543_s4 + $0x78] sm:$0xff]  ;;  %v1223_v5 = vld [vmem:[%s2543_s4 + $0x70] sm:$0xff] }
   0x3   :  { %1013 = vmatmul.msk.f32.vlgmr.msra.gmra.mxu0 %vm48_vm1, %v35_v1  ;;  %236 = vmatpush.msra.mxu2 %v1213_v3  ;;  %v1230_v6 = vld [vmem:[%s2542_s2 + $0x68] sm:$0xff]  ;;  %v1243_v8 = vld [vmem:[%s2542_s2 + $0x60] sm:$0xff]  ;;  %v1257_v10 = vld [vmem:[%s2542_s2 + $0x58] sm:$0xff] }
   0x4   :  { %212 = vmatpush.msra.mxu1 %v1218_v4  ;;  %v1236_v7 = vld [vmem:[%s2543_s4 + $0x68] sm:$0xff]  ;;  %258 = vmatpush.msra.mxu3 %v1207_v2  ;;  %v1250_v9 = vld [vmem:[%s2543_s4 + $0x60] sm:$0xff]  ;;  %v1264_v11 = vld [vmem:[%s2543_s4 + $0x58] sm:$0xff] }
   0x5   :  { %237 = vmatpush.msra.mxu2 %v1223_v5  ;;  %347 = vmatpush.msrb.mxu0 %v1207_v2  ;;  %v1271_v12 = vld [vmem:[%s2542_s2 + $0x50] sm:$0xff]  ;;  %v1285_v14 = vld [vmem:[%s2542_s2 + $0x48] sm:$0xff]  ;;  %v1299_v16 = vld [vmem:[%s2542_s2 + $0x40] sm:$0xff] }
   0x6   :  { %213 = vmatpush.msra.mxu1 %v1230_v6  ;;  %259 = vmatpush.msra.mxu3 %v1218_v4  ;;  %v1278_v13 = vld [vmem:[%s2543_s4 + $0x50] sm:$0xff]  ;;  %v1292_v15 = vld [vmem:[%s2543_s4 + $0x48] sm:$0xff]  ;;  %v1306_v17 = vld [vmem:[%s2543_s4 + $0x40] sm:$0xff] }
   0x7   :  { %238 = vmatpush.msra.mxu2 %v1236_v7  ;;  %348 = vmatpush.msrb.mxu0 %v1218_v4  ;;  %v1313_v18 = vld [vmem:[%s2542_s2 + $0x38] sm:$0xff]  ;;  %v1327_v20 = vld [vmem:[%s2542_s2 + $0x30] sm:$0xff]  ;;  %v1341_v22 = vld [vmem:[%s2542_s2 + $0x28] sm:$0xff] }
   0x8   :  { %214 = vmatpush.msra.mxu1 %v1243_v8  ;;  %260 = vmatpush.msra.mxu3 %v1230_v6  ;;  %v1320_v19 = vld [vmem:[%s2543_s4 + $0x38] sm:$0xff]  ;;  %2618 = vst [vmem:[#allocation4_spill] sm:$0xff] %v1327_v20  ;;  %v1334_v21 = vld [vmem:[%s2543_s4 + $0x30] sm:$0xff]  ;;  %v1348_v23 = vld [vmem:[%s2543_s4 + $0x28] sm:$0xff] }
   0x9   :  { %239 = vmatpush.msra.mxu2 %v1250_v9  ;;  %349 = vmatpush.msrb.mxu0 %v1230_v6  ;;  %2617 = vst [vmem:[#allocation3_spill] sm:$0xff] %v1320_v19  ;;  %v1362_v24 = vld [vmem:[%s2542_s2 + $0x20] sm:$0xff]  ;;  %v1374_v26 = vld [vmem:[%s2542_s2 + $0x18] sm:$0xff]  ;;  %v1388_v28 = vld [vmem:[%s2542_s2 + $0x10] sm:$0xff] }
   0xa   :  { %215 = vmatpush.msra.mxu1 %v1257_v10  ;;  %261 = vmatpush.msra.mxu3 %v1243_v8  ;;  %2619 = vst [vmem:[#allocation5_spill] sm:$0xff] %v1334_v21  ;;  %v1367_v25 = vld [vmem:[%s2543_s4 + $0x20] sm:$0xff]  ;;  %v1379_v27 = vld [vmem:[%s2543_s4 + $0x18] sm:$0xff]  ;;  %v1393_v29 = vld [vmem:[%s2543_s4 + $0x10] sm:$0xff] }
   0xb   :  { %240 = vmatpush.msra.mxu2 %v1264_v11  ;;  %350 = vmatpush.msrb.mxu0 %v1243_v8  ;;  %2620 = vst [vmem:[#allocation6_spill] sm:$0xff] %v1341_v22  ;;  %v1398_v30 = vld [vmem:[%s2542_s2 + $0x8] sm:$0xff]  ;;  %v1416_v33 = vld [vmem:[%s2542_s2] sm:$0xff]  ;;  %v1434_v35 = vld [vmem:[%s2545_s5 + $0x78] sm:$0xff] }
   0xc   :  { %216 = vmatpush.msra.mxu1 %v1271_v12  ;;  %262 = vmatpush.msra.mxu3 %v1257_v10  ;;  %2621 = vst [vmem:[#allocation7_spill] sm:$0xff] %v1348_v23  ;;  %v1403_v31 = vld [vmem:[%s2543_s4 + $0x8] sm:$0xff]  ;;  %v1421_v34 = vld [vmem:[%s2543_s4] sm:$0xff]  ;;  %v1440_v36 = vld [vmem:[%s2545_s5 + $0x70] sm:$0xff] }
   0xd   :  { %241 = vmatpush.msra.mxu2 %v1278_v13  ;;  %351 = vmatpush.msrb.mxu0 %v1257_v10  ;;  %2622 = vst [vmem:[#allocation8_spill] sm:$0xff] %v1362_v24  ;;  %v36_v32 = vld [vmem:[%s2541_s0 + $0x8] sm:$0xff]  ;;  %v1445_v37 = vld [vmem:[%s2546_s7 + $0x78] sm:$0xff]  ;;  %v1452_v38 = vld [vmem:[%s2546_s7 + $0x70] sm:$0xff] }
   0xe   :  { %217 = vmatpush.msra.mxu1 %v1285_v14  ;;  %263 = vmatpush.msra.mxu3 %v1271_v12  ;;  %2623 = vst [vmem:[#allocation9_spill] sm:$0xff] %v1367_v25  ;;  %v1458_v39 = vld [vmem:[%s2545_s5 + $0x68] sm:$0xff]  ;;  %v1472_v41 = vld [vmem:[%s2545_s5 + $0x60] sm:$0xff]  ;;  %v1486_v43 = vld [vmem:[%s2545_s5 + $0x58] sm:$0xff] }
   0xf   :  { %242 = vmatpush.msra.mxu2 %v1292_v15  ;;  %352 = vmatpush.msrb.mxu0 %v1271_v12  ;;  %2624 = vst [vmem:[#allocation10_spill] sm:$0xff] %v1374_v26  ;;  %v1463_v40 = vld [vmem:[%s2546_s7 + $0x68] sm:$0xff]  ;;  %v1477_v42 = vld [vmem:[%s2546_s7 + $0x60] sm:$0xff]  ;;  %v1491_v44 = vld [vmem:[%s2546_s7 + $0x58] sm:$0xff] }
  0x10   :  { %218 = vmatpush.msra.mxu1 %v1299_v16  ;;  %264 = vmatpush.msra.mxu3 %v1285_v14  ;;  %2625 = vst [vmem:[#allocation11_spill] sm:$0xff] %v1379_v27  ;;  %v1499_v45 = vld [vmem:[%s2545_s5 + $0x50] sm:$0xff]  ;;  %v1512_v47 = vld [vmem:[%s2545_s5 + $0x48] sm:$0xff]  ;;  %v1524_v48 = vld [vmem:[%s2544_s3] ss:$0 sm:$0xff] }
  0x11   :  { %243 = vmatpush.msra.mxu2 %v1306_v17  ;;  %353 = vmatpush.msrb.mxu0 %v1285_v14  ;;  %2626 = vst [vmem:[#allocation12_spill] sm:$0xff] %v1388_v28  ;;  %v1504_v46 = vld [vmem:[%s2546_s7 + $0x50] sm:$0xff]  ;;  %v1552_v52 = vld [vmem:[%s2545_s5 + $0x40] sm:$0xff]  ;;  %v1557_v53 = vld [vmem:[%s2546_s7 + $0x48] sm:$0xff] }
  0x12   :  { %219 = vmatpush.msra.mxu1 %v1313_v18  ;;  %265 = vmatpush.msra.mxu3 %v1299_v16  ;;  %2627 = vst [vmem:[#allocation13_spill] sm:$0xff] %v1393_v29  ;;  %v1564_v54 = vld [vmem:[%s2545_s5 + $0x38] sm:$0xff]  ;;  %v1569_v55 = vld [vmem:[%s2546_s7 + $0x40] sm:$0xff]  ;;  %v1576_v56 = vld [vmem:[%s2545_s5 + $0x30] sm:$0xff] }
  0x13   :  { %244 = vmatpush.msra.mxu2 %v1320_v19  ;;  %354 = vmatpush.msrb.mxu0 %v1299_v16  ;;  %2628 = vst [vmem:[#allocation14_spill] sm:$0xff] %v1398_v30  ;;  %v1581_v57 = vld [vmem:[%s2546_s7 + $0x38] sm:$0xff]  ;;  %v1588_v58 = vld [vmem:[%s2545_s5 + $0x28] sm:$0xff]  ;;  %v1593_v59 = vld [vmem:[%s2546_s7 + $0x30] sm:$0xff] }
  0x14   :  { %220 = vmatpush.msra.mxu1 %v1327_v20  ;;  %266 = vmatpush.msra.mxu3 %v1313_v18  ;;  %2629 = vst [vmem:[#allocation15_spill] sm:$0xff] %v1403_v31  ;;  %v1600_v60 = vld [vmem:[%s2545_s5 + $0x20] sm:$0xff]  ;;  %v1605_v61 = vld [vmem:[%s2546_s7 + $0x28] sm:$0xff]  ;;  %v1612_v62 = vld [vmem:[%s2545_s5 + $0x18] sm:$0xff] }
  0x15   :  { %245 = vmatpush.msra.mxu2 %v1334_v21  ;;  %355 = vmatpush.msrb.mxu0 %v1313_v18  ;;  %2630 = vst [vmem:[#allocation16_spill] sm:$0xff] %v1416_v33  ;;  %v1617_v63 = vld [vmem:[%s2546_s7 + $0x20] sm:$0xff]  ;;  %v1624_v0 = vld [vmem:[%s2545_s5 + $0x10] sm:$0xff]  ;;  %v1629_v1 = vld [vmem:[%s2546_s7 + $0x18] sm:$0xff] }
  0x16   :  { %221 = vmatpush.msra.mxu1 %v1341_v22  ;;  %267 = vmatpush.msra.mxu3 %v1327_v20  ;;  %2631 = vst [vmem:[#allocation17_spill] sm:$0xff] %v1421_v34 }
  0x17   :  { %246 = vmatpush.msra.mxu2 %v1348_v23  ;;  %356 = vmatpush.msrb.mxu0 %v1327_v20  ;;  %2632 = vst [vmem:[#allocation18_spill] sm:$0xff] %v1434_v35 }
  0x18   :  { %268 = vmatpush.msra.mxu3 %v1341_v22  ;;  %222 = vmatpush.msra.mxu1 %v1362_v24  ;;  %2633 = vst [vmem:[#allocation19_spill] sm:$0xff] %v1440_v36 }
  0x19   :  { %357 = vmatpush.msrb.mxu0 %v1341_v22  ;;  %247 = vmatpush.msra.mxu2 %v1367_v25  ;;  %2634 = vst [vmem:[#allocation20_spill] sm:$0xff] %v1458_v39 }
  0x1a   :  { %269 = vmatpush.msra.mxu3 %v1362_v24  ;;  %223 = vmatpush.msra.mxu1 %v1374_v26  ;;  %2635 = vst [vmem:[#allocation21_spill] sm:$0xff] %v1472_v41 }
  0x1b   :  { %358 = vmatpush.msrb.mxu0 %v1362_v24  ;;  %248 = vmatpush.msra.mxu2 %v1379_v27  ;;  %2636 = vst [vmem:[#allocation22_spill] sm:$0xff] %v1486_v43 }
  0x1c   :  { %270 = vmatpush.msra.mxu3 %v1374_v26  ;;  %224 = vmatpush.msra.mxu1 %v1388_v28  ;;  %2637 = vst [vmem:[#allocation23_spill] sm:$0xff] %v1499_v45 }
  0x1d   :  { %359 = vmatpush.msrb.mxu0 %v1374_v26  ;;  %249 = vmatpush.msra.mxu2 %v1393_v29  ;;  %2638 = vst [vmem:[#allocation24_spill] sm:$0xff] %v1512_v47 }
  0x1e   :  { %1014 = vmatmul.msk.f32.gmra.mxu0 %vm48_vm1, %v36_v32  ;;  %271 = vmatpush.msra.mxu3 %v1388_v28  ;;  %2639 = vst [vmem:[#allocation25_spill] sm:$0xff] %v1552_v52  ;;  %v1634_v32 = vld [vmem:[%s2545_s5 + $0x8] sm:$0xff] }
  0x1f   :  { %225 = vmatpush.msra.mxu1 %v1398_v30  ;;  %250 = vmatpush.msra.mxu2 %v1403_v31  ;;  %2640 = vst [vmem:[#allocation26_spill] sm:$0xff] %v1564_v54 }
  0x20   :  { %272 = vmatpush.msra.mxu3 %v1398_v30  ;;  %360 = vmatpush.msrb.mxu0 %v1388_v28  ;;  %2641 = vst [vmem:[#allocation27_spill] sm:$0xff] %v1576_v56 }
  0x21   :  { %226 = vmatpush.msra.mxu1 %v1416_v33  ;;  %251 = vmatpush.msra.mxu2 %v1421_v34  ;;  %2642 = vst [vmem:[#allocation28_spill] sm:$0xff] %v1588_v58 }
  0x22   :  { %273 = vmatpush.msra.mxu3 %v1416_v33  ;;  %361 = vmatpush.msrb.mxu0 %v1398_v30  ;;  %2643 = vst [vmem:[#allocation29_spill] sm:$0xff] %v1600_v60 }
  0x23   :  { %280 = vmatpush.msrb.mxu1 %v1213_v3  ;;  %300 = vmatpush.msrb.mxu2 %v1434_v35  ;;  %2644 = vst [vmem:[#allocation30_spill] sm:$0xff] %v1612_v62 }
  0x24   :  { %325 = vmatpush.msrb.mxu3 %v1445_v37  ;;  %362 = vmatpush.msrb.mxu0 %v1416_v33  ;;  %2645 = vst [vmem:[#allocation31_spill] sm:$0xff] %v1624_v0  ;;  %v1682_v33 = vld [vmem:[%s2548_s8 + $0x70] sm:$0xff] }
  0x25   :  { %281 = vmatpush.msrb.mxu1 %v1223_v5  ;;  %301 = vmatpush.msrb.mxu2 %v1440_v36  ;;  %2646 = vst [vmem:[#allocation32_spill] sm:$0xff] %v1634_v32 }
  0x26   :  { %326 = vmatpush.msrb.mxu3 %v1452_v38  ;;  %2650 = vst [vmem:[#allocation36_spill] sm:$0xff] %v1682_v33 }
  0x27   :  { %282 = vmatpush.msrb.mxu1 %v1236_v7  ;;  %302 = vmatpush.msrb.mxu2 %v1458_v39 }
  0x28   :  { %327 = vmatpush.msrb.mxu3 %v1463_v40 }
  0x29   :  { %283 = vmatpush.msrb.mxu1 %v1250_v9  ;;  %303 = vmatpush.msrb.mxu2 %v1472_v41 }
  0x2a   :  { %328 = vmatpush.msrb.mxu3 %v1477_v42 }
  0x2b   :  { %284 = vmatpush.msrb.mxu1 %v1264_v11  ;;  %304 = vmatpush.msrb.mxu2 %v1486_v43 }
  0x2c   :  { %329 = vmatpush.msrb.mxu3 %v1491_v44 }
  0x2d   :  { %285 = vmatpush.msrb.mxu1 %v1278_v13  ;;  %305 = vmatpush.msrb.mxu2 %v1499_v45 }
  0x2e   :  { %330 = vmatpush.msrb.mxu3 %v1504_v46 }
  0x2f   :  { %286 = vmatpush.msrb.mxu1 %v1292_v15  ;;  %306 = vmatpush.msrb.mxu2 %v1512_v47 }
  0x30   :  { %331 = vmatpush.msrb.mxu3 %v1557_v53 }
  0x31   :  { %287 = vmatpush.msrb.mxu1 %v1306_v17  ;;  %307 = vmatpush.msrb.mxu2 %v1552_v52 }
  0x32   :  { %332 = vmatpush.msrb.mxu3 %v1569_v55 }
  0x33   :  { %288 = vmatpush.msrb.mxu1 %v1320_v19  ;;  %308 = vmatpush.msrb.mxu2 %v1564_v54 }
  0x34   :  { %333 = vmatpush.msrb.mxu3 %v1581_v57 }
  0x35   :  { %289 = vmatpush.msrb.mxu1 %v1334_v21  ;;  %309 = vmatpush.msrb.mxu2 %v1576_v56 }
  0x36   :  { %334 = vmatpush.msrb.mxu3 %v1593_v59 }
  0x37   :  { %290 = vmatpush.msrb.mxu1 %v1348_v23  ;;  %310 = vmatpush.msrb.mxu2 %v1588_v58 }
  0x38   :  { %335 = vmatpush.msrb.mxu3 %v1605_v61 }
  0x39   :  { %291 = vmatpush.msrb.mxu1 %v1367_v25  ;;  %311 = vmatpush.msrb.mxu2 %v1600_v60 }
  0x3a   :  { %336 = vmatpush.msrb.mxu3 %v1617_v63 }
  0x3b   :  { %292 = vmatpush.msrb.mxu1 %v1379_v27  ;;  %312 = vmatpush.msrb.mxu2 %v1612_v62 }
  0x3c   :  { %337 = vmatpush.msrb.mxu3 %v1629_v1 }
  0x3d   :  { %293 = vmatpush.msrb.mxu1 %v1393_v29  ;;  %313 = vmatpush.msrb.mxu2 %v1624_v0 }
  0x3f   :  { %294 = vmatpush.msrb.mxu1 %v1403_v31  ;;  %314 = vmatpush.msrb.mxu2 %v1634_v32 }
  0x41   :  { %295 = vmatpush.msrb.mxu1 %v1421_v34 }
  0x80   :  { %v94_v49 = vpop.f32.mrf.mxu0 }
  0x81   :  { %v95_v50 = vadd.f32 %v1524_v48, %v94_v49  ;;  %v1641_v49 = vld [vmem:[%s2546_s7 + $0x10] sm:$0xff] }
  0x82   :  { %338 = vmatpush.msrb.mxu3 %v1641_v49 }
  0x83   :  { %1024 = vtanh.f32 %v95_v50  ;;  %v37_v50 = vld [vmem:[%s2541_s0 + $0x10] sm:$0xff] }
  0x84   :  { %1015 = vmatmul.msk.f32.gmra.mxu0 %vm48_vm1, %v37_v50  ;;  %v1664_v50 = vld [vmem:[%s2546_s7] sm:$0xff] }
  0x85   :  { %2648 = vst [vmem:[#allocation34_spill] sm:$0xff] %v1664_v50 }
  0x89   :  { %v1025_v51 = vpop.eup %1024 }
  0x8a   :  { %227 = vmatmul.f32.vlgmr.msra.gmra.mxu1 %v1025_v51  ;;  %252 = vmatmul.f32.vlgmr.msra.gmra.mxu2 %v1025_v51  ;;  %v1650_v51 = vld [vmem:[%s2545_s5] sm:$0xff] }
  0x8b   :  { %369 = vmatpush.msra.mxu1 %v1213_v3  ;;  %2647 = vst [vmem:[#allocation33_spill] sm:$0xff] %v1650_v51  ;;  %315 = vmatpush.msrb.mxu2 %v1650_v51 }
  0x8d   :  { %370 = vmatpush.msra.mxu1 %v1223_v5  ;;  %389 = vmatpush.msra.mxu2 %v1434_v35 }
  0x8f   :  { %371 = vmatpush.msra.mxu1 %v1236_v7  ;;  %390 = vmatpush.msra.mxu2 %v1440_v36  ;;  %v1689_v36 = vld [vmem:[%s2548_s8 + $0x68] sm:$0xff] }
  0x90   :  { %2651 = vst [vmem:[#allocation37_spill] sm:$0xff] %v1689_v36 }
  0x91   :  { %372 = vmatpush.msra.mxu1 %v1250_v9  ;;  %391 = vmatpush.msra.mxu2 %v1458_v39 }
  0x93   :  { %373 = vmatpush.msra.mxu1 %v1264_v11  ;;  %392 = vmatpush.msra.mxu2 %v1472_v41 }
  0x95   :  { %374 = vmatpush.msra.mxu1 %v1278_v13  ;;  %393 = vmatpush.msra.mxu2 %v1486_v43 }
  0x97   :  { %375 = vmatpush.msra.mxu1 %v1292_v15  ;;  %394 = vmatpush.msra.mxu2 %v1499_v45 }
  0x99   :  { %376 = vmatpush.msra.mxu1 %v1306_v17  ;;  %395 = vmatpush.msra.mxu2 %v1512_v47 }
  0x9b   :  { %377 = vmatpush.msra.mxu1 %v1320_v19  ;;  %v97_v41 = vpop.f32.mrf.mxu0  ;;  %396 = vmatpush.msra.mxu2 %v1552_v52 }
  0x9d   :  { %378 = vmatpush.msra.mxu1 %v1334_v21  ;;  %397 = vmatpush.msra.mxu2 %v1564_v54 }
  0x9f   :  { %379 = vmatpush.msra.mxu1 %v1348_v23  ;;  %398 = vmatpush.msra.mxu2 %v1576_v56 }
  0xa1   :  { %380 = vmatpush.msra.mxu1 %v1367_v25  ;;  %399 = vmatpush.msra.mxu2 %v1588_v58 }
  0xa3   :  { %381 = vmatpush.msra.mxu1 %v1379_v27  ;;  %400 = vmatpush.msra.mxu2 %v1600_v60 }
  0xa5   :  { %382 = vmatpush.msra.mxu1 %v1393_v29  ;;  %v1675_v29 = vld [vmem:[%s2548_s8 + $0x78] sm:$0xff]  ;;  %401 = vmatpush.msra.mxu2 %v1612_v62 }
  0xa6   :  { %2649 = vst [vmem:[#allocation35_spill] sm:$0xff] %v1675_v29  ;;  %431 = vmatpush.msra.mxu0 %v1675_v29  ;;  %v39_v29 = vld [vmem:[%s2541_s0 + $0x20] sm:$0xff] }
  0xa7   :  { %383 = vmatpush.msra.mxu1 %v1403_v31  ;;  %v38_v31 = vld [vmem:[%s2541_s0 + $0x18] sm:$0xff]  ;;  %402 = vmatpush.msra.mxu2 %v1624_v0 }
  0xa8   :  { %1016 = vmatmul.msk.f32.gmra.mxu0 %vm48_vm1, %v38_v31  ;;  %v1696_v31 = vld [vmem:[%s2548_s8 + $0x60] sm:$0xff] }
  0xa9   :  { %384 = vmatpush.msra.mxu1 %v1421_v34  ;;  %v1655_v34 = vld [vmem:[%s2546_s7 + $0x8] sm:$0xff]  ;;  %432 = vmatpush.msra.mxu0 %v1682_v33  ;;  %v98_v33 = vadd.f32 %v1524_v48, %v97_v41 }
  0xaa   :  { %339 = vmatpush.msrb.mxu3 %v1655_v34  ;;  %403 = vmatpush.msra.mxu2 %v1634_v32 }
  0xab   :  { %433 = vmatpush.msra.mxu0 %v1689_v36  ;;  %v40_v36 = vld [vmem:[%s2541_s0 + $0x28] sm:$0xff] }
  0xac   :  { %340 = vmatpush.msrb.mxu3 %v1664_v50  ;;  %404 = vmatpush.msra.mxu2 %v1650_v51 }
  0xad   :  { %434 = vmatpush.msra.mxu0 %v1696_v31 }
  0xb0   :  { %1017 = vmatmul.msk.f32.gmra.mxu0 %vm48_vm1, %v39_v29  ;;  %v1716_v29 = vld [vmem:[%s2547_s6] ss:$0 sm:$0xff] }
  0xb8   :  { %1018 = vmatmul.msk.f32.gmra.mxu0 %vm48_vm1, %v40_v36 }
 0x107   :  { %v228_v43 = vpop.f32.mrf.mxu1 }
 0x108   :  { %v231_v39 = vadd.f32 %v228_v43, %v98_v33 }
 0x10a   :  { %1026 = vtanh.f32 %v231_v39  ;;  %v41_v39 = vld [vmem:[%s2541_s0 + $0x30] sm:$0xff] }
 0x10b   :  { %1019 = vmatmul.msk.f32.gmra.mxu0 %vm48_vm1, %v41_v39  ;;  %v2655_v39 = vld [vmem:[#allocation15_spill] sm:$0xff] }
 0x10d   :  { %v253_v41 = vpop.f32.mrf.mxu2 }
 0x10e   :  { %v254_v33 = vadd.f32 %v1716_v29, %v253_v41  ;;  %v2652_v41 = vld [vmem:[#allocation16_spill] sm:$0xff] }
 0x110   :  { %v1027_v43 = vpop.eup %1026  ;;  %1028 = vtanh.f32 %v254_v33  ;;  %v2653_v33 = vld [vmem:[#allocation13_spill] sm:$0xff] }
 0x111   :  { %274 = vmatmul.f32.vlgmr.msra.gmra.mxu3 %v1027_v43  ;;  %296 = vmatmul.f32.vlgmr.msrb.gmra.mxu1 %v1027_v43  ;;  %v2654_v43 = vld [vmem:[#allocation19_spill] sm:$0xff] }
 0x112   :  { %411 = vmatpush.msra.mxu3 %v1445_v37  ;;  %454 = vmatpush.msrb.mxu1 %v1207_v2 }
 0x114   :  { %412 = vmatpush.msra.mxu3 %v1452_v38  ;;  %455 = vmatpush.msrb.mxu1 %v1218_v4 }
 0x116   :  { %v1029_v36 = vpop.eup %1028  ;;  %413 = vmatpush.msra.mxu3 %v1463_v40  ;;  %456 = vmatpush.msrb.mxu1 %v1230_v6 }
 0x117   :  { %316 = vmatmul.f32.vlgmr.msrb.gmra.mxu2 %v1029_v36 }
 0x118   :  { %414 = vmatpush.msra.mxu3 %v1477_v42  ;;  %476 = vmatpush.msrb.mxu2 %v1213_v3 }
 0x119   :  { %341 = vmatmul.f32.vlgmr.msrb.gmra.mxu3 %v1029_v36  ;;  %457 = vmatpush.msrb.mxu1 %v1243_v8  ;;  %v2656_v36 = vld [vmem:[#allocation20_spill] sm:$0xff] }
 0x11a   :  { %415 = vmatpush.msra.mxu3 %v1491_v44  ;;  %477 = vmatpush.msrb.mxu2 %v1223_v5 }
 0x11b   :  { %458 = vmatpush.msrb.mxu1 %v1257_v10 }
 0x11c   :  { %416 = vmatpush.msra.mxu3 %v1504_v46  ;;  %478 = vmatpush.msrb.mxu2 %v1236_v7 }
 0x11d   :  { %459 = vmatpush.msrb.mxu1 %v1271_v12 }
 0x11e   :  { %417 = vmatpush.msra.mxu3 %v1557_v53  ;;  %479 = vmatpush.msrb.mxu2 %v1250_v9 }
 0x11f   :  { %460 = vmatpush.msrb.mxu1 %v1285_v14 }
 0x120   :  { %418 = vmatpush.msra.mxu3 %v1569_v55  ;;  %480 = vmatpush.msrb.mxu2 %v1264_v11 }
 0x121   :  { %461 = vmatpush.msrb.mxu1 %v1299_v16 }
 0x122   :  { %419 = vmatpush.msra.mxu3 %v1581_v57  ;;  %481 = vmatpush.msrb.mxu2 %v1278_v13 }
 0x123   :  { %462 = vmatpush.msrb.mxu1 %v1313_v18 }
 0x124   :  { %420 = vmatpush.msra.mxu3 %v1593_v59  ;;  %482 = vmatpush.msrb.mxu2 %v1292_v15 }
 0x125   :  { %463 = vmatpush.msrb.mxu1 %v1327_v20 }
 0x126   :  { %421 = vmatpush.msra.mxu3 %v1605_v61  ;;  %483 = vmatpush.msrb.mxu2 %v1306_v17 }
 0x127   :  { %464 = vmatpush.msrb.mxu1 %v1341_v22 }
 0x128   :  { %422 = vmatpush.msra.mxu3 %v1617_v63  ;;  %484 = vmatpush.msrb.mxu2 %v1320_v19 }
 0x129   :  { %465 = vmatpush.msrb.mxu1 %v1362_v24 }
 0x12a   :  { %423 = vmatpush.msra.mxu3 %v1629_v1  ;;  %485 = vmatpush.msrb.mxu2 %v1334_v21 }
 0x12b   :  { %466 = vmatpush.msrb.mxu1 %v1374_v26 }
 0x12c   :  { %424 = vmatpush.msra.mxu3 %v1641_v49  ;;  %486 = vmatpush.msrb.mxu2 %v1348_v23 }
 0x12d   :  { %467 = vmatpush.msrb.mxu1 %v1388_v28  ;;  %v2657_v28 = vld [vmem:[#allocation17_spill] sm:$0xff] }
 0x12e   :  { %425 = vmatpush.msra.mxu3 %v1655_v34  ;;  %487 = vmatpush.msrb.mxu2 %v1367_v25  ;;  %v2658_v25 = vld [vmem:[#allocation21_spill] sm:$0xff] }
 0x12f   :  { %468 = vmatpush.msrb.mxu1 %v1398_v30  ;;  %v2659_v30 = vld [vmem:[#allocation22_spill] sm:$0xff] }
 0x130   :  { %426 = vmatpush.msra.mxu3 %v1664_v50  ;;  %488 = vmatpush.msrb.mxu2 %v1379_v27  ;;  %v1875_v27 = vld [vmem:[%s2549_s9] ss:$0 sm:$0xff] }
 0x131   :  { %469 = vmatpush.msrb.mxu1 %v2652_v41 }
 0x132   :  { %496 = vmatpush.msrb.mxu3 %v1434_v35  ;;  %489 = vmatpush.msrb.mxu2 %v2653_v33 }
 0x134   :  { %497 = vmatpush.msrb.mxu3 %v2654_v43  ;;  %490 = vmatpush.msrb.mxu2 %v2655_v39 }
 0x136   :  { %498 = vmatpush.msrb.mxu3 %v2656_v36  ;;  %491 = vmatpush.msrb.mxu2 %v2657_v28  ;;  %v1867_v28 = vld [vmem:[%s2548_s8] sm:$0xff] }
 0x137   :  { %2660 = vst [vmem:[#allocation38_spill] sm:$0xff] %v1867_v28 }
 0x138   :  { %499 = vmatpush.msrb.mxu3 %v2658_v25 }
 0x13a   :  { %500 = vmatpush.msrb.mxu3 %v2659_v30  ;;  %v100_v30 = vpop.f32.mrf.mxu0 }
 0x13b   :  { %v101_v39 = vadd.f32 %v1524_v48, %v100_v30  ;;  %v2662_v30 = vld [vmem:[#allocation36_spill] sm:$0xff] }
 0x13c   :  { %501 = vmatpush.msrb.mxu3 %v1499_v45  ;;  %v1860_v45 = vld [vmem:[%s2548_s8 + $0x8] sm:$0xff] }
 0x13e   :  { %502 = vmatpush.msrb.mxu3 %v1512_v47  ;;  %v1855_v47 = vld [vmem:[%s2548_s8 + $0x10] sm:$0xff] }
 0x140   :  { %503 = vmatpush.msrb.mxu3 %v1552_v52  ;;  %v1797_v52 = vld [vmem:[%s2548_s8 + $0x58] sm:$0xff] }
 0x141   :  { %435 = vmatpush.msra.mxu0 %v1797_v52 }
 0x142   :  { %504 = vmatpush.msrb.mxu3 %v1564_v54  ;;  %v1849_v54 = vld [vmem:[%s2548_s8 + $0x18] sm:$0xff] }
 0x144   :  { %505 = vmatpush.msrb.mxu3 %v1576_v56  ;;  %v1837_v56 = vld [vmem:[%s2548_s8 + $0x28] sm:$0xff] }
 0x146   :  { %506 = vmatpush.msrb.mxu3 %v1588_v58  ;;  %v1803_v58 = vld [vmem:[%s2548_s8 + $0x50] sm:$0xff] }
 0x147   :  { %436 = vmatpush.msra.mxu0 %v1803_v58 }
 0x148   :  { %507 = vmatpush.msrb.mxu3 %v1600_v60  ;;  %v1831_v60 = vld [vmem:[%s2548_s8 + $0x30] sm:$0xff] }
 0x14a   :  { %508 = vmatpush.msrb.mxu3 %v1612_v62  ;;  %v1825_v62 = vld [vmem:[%s2548_s8 + $0x38] sm:$0xff] }
 0x14c   :  { %509 = vmatpush.msrb.mxu3 %v1624_v0  ;;  %v1808_v0 = vld [vmem:[%s2548_s8 + $0x48] sm:$0xff] }
 0x14d   :  { %437 = vmatpush.msra.mxu0 %v1808_v0 }
 0x14e   :  { %510 = vmatpush.msrb.mxu3 %v1634_v32  ;;  %v42_v32 = vld [vmem:[%s2541_s0 + $0x38] sm:$0xff] }
 0x14f   :  { %1020 = vmatmul.msk.f32.gmra.mxu0 %vm48_vm1, %v42_v32  ;;  %v1843_v32 = vld [vmem:[%s2548_s8 + $0x20] sm:$0xff] }
 0x150   :  { %511 = vmatpush.msrb.mxu3 %v1650_v51  ;;  %v1815_v51 = vld [vmem:[%s2548_s8 + $0x40] sm:$0xff] }
 0x151   :  { %438 = vmatpush.msra.mxu0 %v1815_v51 }
 0x153   :  { %439 = vmatpush.msra.mxu0 %v1825_v62 }
 0x155   :  { %440 = vmatpush.msra.mxu0 %v1831_v60 }
 0x157   :  { %441 = vmatpush.msra.mxu0 %v1837_v56 }
 0x159   :  { %442 = vmatpush.msra.mxu0 %v1843_v32 }
 0x15b   :  { %443 = vmatpush.msra.mxu0 %v1849_v54 }
 0x15d   :  { %444 = vmatpush.msra.mxu0 %v1855_v47 }
 0x15f   :  { %445 = vmatpush.msra.mxu0 %v1860_v45 }
 0x161   :  { %446 = vmatpush.msra.mxu0 %v1867_v28 }
 0x18e   :  { %v297_v33 = vpop.f32.mrf.mxu1 }
 0x18f   :  { %v298_v36 = vadd.f32 %v1716_v29, %v297_v33  ;;  %v2663_v33 = vld [vmem:[#allocation37_spill] sm:$0xff] }
 0x194   :  { %v275_v25 = vpop.f32.mrf.mxu3 }
 0x195   :  { %v278_v41 = vadd.f32 %v275_v25, %v101_v39  ;;  %v2661_v25 = vld [vmem:[#allocation35_spill] sm:$0xff]  ;;  %v2668_v39 = vld [vmem:[#allocation9_spill] sm:$0xff] }
 0x197   :  { %1030 = vtanh.f32 %v278_v41 }
 0x19a   :  { %v317_v43 = vpop.f32.mrf.mxu2 }
 0x19b   :  { %v320_v35 = vadd.f32 %v317_v43, %v298_v36  ;;  %v2667_v43 = vld [vmem:[#allocation18_spill] sm:$0xff]  ;;  %v2669_v36 = vld [vmem:[#allocation12_spill] sm:$0xff] }
 0x19c   :  { %v342_v26 = vpop.f32.mrf.mxu3 }
 0x19d   :  { %v1031_v50 = vpop.eup %1030  ;;  %1032 = vtanh.f32 %v320_v35  ;;  %v343_v28 = vadd.f32 %v1875_v27, %v342_v26  ;;  %v2664_v26 = vld [vmem:[#allocation34_spill] sm:$0xff] }
 0x19e   :  { %363 = vmatmul.f32.vlgmr.msrb.gmra.mxu0 %v1031_v50  ;;  %385 = vmatmul.f32.vlgmr.msra.gmra.mxu1 %v1031_v50  ;;  %v2666_v50 = vld [vmem:[#allocation10_spill] sm:$0xff] }
 0x19f   :  { %1034 = vtanh.f32 %v343_v28  ;;  %518 = vmatpush.msrb.mxu0 %v1445_v37  ;;  %538 = vmatpush.msra.mxu1 %v2661_v25  ;;  %v2665_v28 = vld [vmem:[#allocation38_spill] sm:$0xff] }
 0x1a1   :  { %519 = vmatpush.msrb.mxu0 %v1452_v38  ;;  %539 = vmatpush.msra.mxu1 %v2662_v30 }
 0x1a3   :  { %v1033_v41 = vpop.eup %1032  ;;  %520 = vmatpush.msrb.mxu0 %v1463_v40  ;;  %540 = vmatpush.msra.mxu1 %v2663_v33 }
 0x1a4   :  { %405 = vmatmul.f32.vlgmr.msra.gmra.mxu2 %v1033_v41  ;;  %427 = vmatmul.f32.vlgmr.msra.gmra.mxu3 %v1033_v41  ;;  %v2670_v41 = vld [vmem:[#allocation19_spill] sm:$0xff] }
 0x1a5   :  { %v1035_v35 = vpop.eup %1034  ;;  %521 = vmatpush.msrb.mxu0 %v1477_v42  ;;  %541 = vmatpush.msra.mxu1 %v1696_v31 }
 0x1a6   :  { %447 = vmatmul.f32.vlgmr.msra.gmra.mxu0 %v1035_v35  ;;  %561 = vmatpush.msra.mxu2 %v1207_v2  ;;  %v2671_v35 = vld [vmem:[#allocation11_spill] sm:$0xff] }
 0x1a7   :  { %522 = vmatpush.msrb.mxu0 %v1491_v44  ;;  %542 = vmatpush.msra.mxu1 %v1797_v52 }
 0x1a8   :  { %562 = vmatpush.msra.mxu2 %v1218_v4  ;;  %583 = vmatpush.msra.mxu3 %v1213_v3 }
 0x1a9   :  { %523 = vmatpush.msrb.mxu0 %v1504_v46  ;;  %543 = vmatpush.msra.mxu1 %v1803_v58 }
 0x1aa   :  { %563 = vmatpush.msra.mxu2 %v1230_v6  ;;  %584 = vmatpush.msra.mxu3 %v1223_v5 }
 0x1ab   :  { %524 = vmatpush.msrb.mxu0 %v1557_v53  ;;  %544 = vmatpush.msra.mxu1 %v1808_v0 }
 0x1ac   :  { %564 = vmatpush.msra.mxu2 %v1243_v8  ;;  %585 = vmatpush.msra.mxu3 %v1236_v7 }
 0x1ad   :  { %525 = vmatpush.msrb.mxu0 %v1569_v55  ;;  %545 = vmatpush.msra.mxu1 %v1815_v51 }
 0x1ae   :  { %565 = vmatpush.msra.mxu2 %v1257_v10  ;;  %586 = vmatpush.msra.mxu3 %v1250_v9 }
 0x1af   :  { %526 = vmatpush.msrb.mxu0 %v1581_v57  ;;  %546 = vmatpush.msra.mxu1 %v1825_v62 }
 0x1b0   :  { %566 = vmatpush.msra.mxu2 %v1271_v12  ;;  %587 = vmatpush.msra.mxu3 %v1264_v11 }
 0x1b1   :  { %527 = vmatpush.msrb.mxu0 %v1593_v59  ;;  %547 = vmatpush.msra.mxu1 %v1831_v60 }
 0x1b2   :  { %567 = vmatpush.msra.mxu2 %v1285_v14  ;;  %588 = vmatpush.msra.mxu3 %v1278_v13 }
 0x1b3   :  { %528 = vmatpush.msrb.mxu0 %v1605_v61  ;;  %548 = vmatpush.msra.mxu1 %v1837_v56 }
 0x1b4   :  { %568 = vmatpush.msra.mxu2 %v1299_v16  ;;  %589 = vmatpush.msra.mxu3 %v1292_v15 }
 0x1b5   :  { %529 = vmatpush.msrb.mxu0 %v1617_v63  ;;  %549 = vmatpush.msra.mxu1 %v1843_v32 }
 0x1b6   :  { %569 = vmatpush.msra.mxu2 %v1313_v18  ;;  %590 = vmatpush.msra.mxu3 %v1306_v17 }
 0x1b7   :  { %530 = vmatpush.msrb.mxu0 %v1629_v1  ;;  %550 = vmatpush.msra.mxu1 %v1849_v54 }
 0x1b8   :  { %570 = vmatpush.msra.mxu2 %v1327_v20  ;;  %591 = vmatpush.msra.mxu3 %v1320_v19  ;;  %v2676_v19 = vld [vmem:[#allocation21_spill] sm:$0xff] }
 0x1b9   :  { %531 = vmatpush.msrb.mxu0 %v1641_v49  ;;  %551 = vmatpush.msra.mxu1 %v1855_v47 }
 0x1ba   :  { %571 = vmatpush.msra.mxu2 %v1341_v22  ;;  %592 = vmatpush.msra.mxu3 %v1334_v21  ;;  %v2672_v21 = vld [vmem:[#allocation14_spill] sm:$0xff]  ;;  %v2675_v22 = vld [vmem:[#allocation16_spill] sm:$0xff] }
 0x1bb   :  { %532 = vmatpush.msrb.mxu0 %v1655_v34  ;;  %552 = vmatpush.msra.mxu1 %v1860_v45 }
 0x1bc   :  { %572 = vmatpush.msra.mxu2 %v1362_v24  ;;  %593 = vmatpush.msra.mxu3 %v1348_v23  ;;  %v2673_v24 = vld [vmem:[#allocation20_spill] sm:$0xff]  ;;  %v2674_v23 = vld [vmem:[#allocation13_spill] sm:$0xff] }
 0x1bd   :  { %533 = vmatpush.msrb.mxu0 %v2664_v26  ;;  %553 = vmatpush.msra.mxu1 %v2665_v28 }
 0x1be   :  { %573 = vmatpush.msra.mxu2 %v2666_v50  ;;  %594 = vmatpush.msra.mxu3 %v2668_v39  ;;  %v2677_v50 = vld [vmem:[#allocation15_spill] sm:$0xff]  ;;  %v2679_v39 = vld [vmem:[#allocation17_spill] sm:$0xff] }
 0x1bf   :  { %603 = vmatpush.msra.mxu0 %v2667_v43  ;;  %v2678_v43 = vld [vmem:[#allocation22_spill] sm:$0xff] }
 0x1c0   :  { %574 = vmatpush.msra.mxu2 %v2669_v36  ;;  %595 = vmatpush.msra.mxu3 %v2671_v35  ;;  %v2680_v36 = vld [vmem:[#allocation23_spill] sm:$0xff]  ;;  %v2682_v35 = vld [vmem:[#allocation25_spill] sm:$0xff] }
 0x1c1   :  { %604 = vmatpush.msra.mxu0 %v2670_v41  ;;  %v2681_v41 = vld [vmem:[#allocation24_spill] sm:$0xff] }
 0x1c2   :  { %575 = vmatpush.msra.mxu2 %v2672_v21  ;;  %596 = vmatpush.msra.mxu3 %v2674_v23  ;;  %v2683_v21 = vld [vmem:[#allocation26_spill] sm:$0xff]  ;;  %v2685_v23 = vld [vmem:[#allocation28_spill] sm:$0xff] }
 0x1c3   :  { %605 = vmatpush.msra.mxu0 %v2673_v24  ;;  %v2684_v24 = vld [vmem:[#allocation27_spill] sm:$0xff] }
 0x1c4   :  { %576 = vmatpush.msra.mxu2 %v2675_v22  ;;  %597 = vmatpush.msra.mxu3 %v2677_v50  ;;  %v2686_v22 = vld [vmem:[#allocation29_spill] sm:$0xff]  ;;  %v2688_v50 = vld [vmem:[#allocation31_spill] sm:$0xff] }
 0x1c5   :  { %606 = vmatpush.msra.mxu0 %v2676_v19  ;;  %v2687_v19 = vld [vmem:[#allocation30_spill] sm:$0xff] }
 0x1c6   :  { %598 = vmatpush.msra.mxu3 %v2679_v39  ;;  %v2690_v39 = vld [vmem:[#allocation33_spill] sm:$0xff] }
 0x1c7   :  { %607 = vmatpush.msra.mxu0 %v2678_v43  ;;  %v2689_v43 = vld [vmem:[#allocation32_spill] sm:$0xff] }
 0x1c9   :  { %608 = vmatpush.msra.mxu0 %v2680_v36  ;;  %v103_v36 = vpop.f32.mrf.mxu0 }
 0x1cb   :  { %609 = vmatpush.msra.mxu0 %v2681_v41 }
 0x1cd   :  { %610 = vmatpush.msra.mxu0 %v2682_v35 }
 0x1cf   :  { %611 = vmatpush.msra.mxu0 %v2683_v21 }
 0x1d1   :  { %612 = vmatpush.msra.mxu0 %v2684_v24  ;;  %v1958_v41 = vpop.f32.mrf.mxu0 }
 0x1d2   :  { %2691 = vst [vmem:[#allocation35_spill] sm:$0xff] %v1958_v41 }
 0x1d3   :  { %613 = vmatpush.msra.mxu0 %v2685_v23  ;;  %v104_v23 = vadd.f32 %v1524_v48, %v103_v36  ;;  %v2716_v36 = vld [vmem:[#allocation25_spill] sm:$0xff] }
 0x1d5   :  { %614 = vmatpush.msra.mxu0 %v2686_v22 }
 0x1d7   :  { %615 = vmatpush.msra.mxu0 %v2687_v19 }
 0x1d9   :  { %616 = vmatpush.msra.mxu0 %v2688_v50  ;;  %v1960_v35 = vpop.f32.mrf.mxu0 }
 0x1da   :  { %2692 = vst [vmem:[#allocation36_spill] sm:$0xff] %v1960_v35 }
 0x1db   :  { %617 = vmatpush.msra.mxu0 %v2689_v43 }
 0x1dd   :  { %618 = vmatpush.msra.mxu0 %v2690_v39 }
 0x1e1   :  { %v1962_v21 = vpop.f32.mrf.mxu0 }
 0x1e2   :  { %2693 = vst [vmem:[#allocation37_spill] sm:$0xff] %v1962_v21 }
 0x1e9   :  { %v1964_v24 = vpop.f32.mrf.mxu0 }
 0x1ea   :  { %2694 = vst [vmem:[#allocation34_spill] sm:$0xff] %v1964_v24 }
 0x21b   :  { %v364_v22 = vpop.f32.mrf.mxu0  ;;  %v386_v19 = vpop.f32.mrf.mxu1 }
 0x21c   :  { %v367_v20 = vadd.f32 %v364_v22, %v104_v23  ;;  %v387_v39 = vadd.f32 %v1716_v29, %v386_v19  ;;  %v2712_v23 = vld [vmem:[#allocation13_spill] sm:$0xff] }
 0x21e   :  { %1036 = vtanh.f32 %v367_v20 }
 0x223   :  { %v448_v20 = vpop.f32.mrf.mxu0 }
 0x224   :  { %v1037_v50 = vpop.eup %1036 }
 0x225   :  { %470 = vmatmul.f32.vlgmr.msrb.gmra.mxu1 %v1037_v50  ;;  %492 = vmatmul.f32.vlgmr.msrb.gmra.mxu2 %v1037_v50  ;;  %v2714_v50 = vld [vmem:[#allocation24_spill] sm:$0xff] }
 0x226   :  { %645 = vmatpush.msrb.mxu2 %v2661_v25  ;;  %625 = vmatpush.msrb.mxu1 %v1445_v37 }
 0x227   :  { %v406_v35 = vpop.f32.mrf.mxu2  ;;  %v428_v41 = vpop.f32.mrf.mxu3 }
 0x228   :  { %v409_v21 = vadd.f32 %v406_v35, %v387_v39  ;;  %v429_v24 = vadd.f32 %v1875_v27, %v428_v41  ;;  %646 = vmatpush.msrb.mxu2 %v2662_v30  ;;  %626 = vmatpush.msrb.mxu1 %v1452_v38  ;;  %v2715_v39 = vld [vmem:[#allocation15_spill] sm:$0xff]  ;;  %v2717_v41 = vld [vmem:[#allocation17_spill] sm:$0xff]  ;;  %v2718_v35 = vld [vmem:[#allocation26_spill] sm:$0xff] }
 0x22a   :  { %1038 = vtanh.f32 %v409_v21  ;;  %v451_v22 = vadd.f32 %v448_v20, %v429_v24  ;;  %647 = vmatpush.msrb.mxu2 %v2663_v33  ;;  %627 = vmatpush.msrb.mxu1 %v1463_v40  ;;  %v2713_v24 = vld [vmem:[#allocation16_spill] sm:$0xff]  ;;  %v2719_v20 = vld [vmem:[#allocation27_spill] sm:$0xff] }
 0x22c   :  { %1040 = vtanh.f32 %v451_v22  ;;  %648 = vmatpush.msrb.mxu2 %v1696_v31  ;;  %628 = vmatpush.msrb.mxu1 %v1477_v42  ;;  %v2720_v22 = vld [vmem:[#allocation28_spill] sm:$0xff] }
 0x22e   :  { %649 = vmatpush.msrb.mxu2 %v1797_v52  ;;  %629 = vmatpush.msrb.mxu1 %v1491_v44 }
 0x230   :  { %v1039_v19 = vpop.eup %1038  ;;  %650 = vmatpush.msrb.mxu2 %v1803_v58  ;;  %630 = vmatpush.msrb.mxu1 %v1504_v46 }
 0x231   :  { %512 = vmatmul.f32.vlgmr.msrb.gmra.mxu3 %v1039_v19  ;;  %534 = vmatmul.f32.vlgmr.msrb.gmra.mxu0 %v1039_v19  ;;  %v2721_v19 = vld [vmem:[#allocation29_spill] sm:$0xff] }
 0x232   :  { %v1041_v21 = vpop.eup %1040  ;;  %651 = vmatpush.msrb.mxu2 %v1808_v0  ;;  %631 = vmatpush.msrb.mxu1 %v1557_v53 }
 0x233   :  { %554 = vmatmul.f32.vlgmr.msra.gmra.mxu1 %v1041_v21  ;;  %668 = vmatpush.msrb.mxu3 %v1207_v2  ;;  %v2695_v2 = vld [vmem:[#allocation4_spill] sm:$0xff]  ;;  %v2722_v21 = vld [vmem:[#allocation30_spill] sm:$0xff] }
 0x234   :  { %652 = vmatpush.msrb.mxu2 %v1815_v51  ;;  %632 = vmatpush.msrb.mxu1 %v1569_v55 }
 0x235   :  { %669 = vmatpush.msrb.mxu3 %v1218_v4  ;;  %690 = vmatpush.msrb.mxu0 %v1213_v3  ;;  %v2696_v3 = vld [vmem:[#allocation18_spill] sm:$0xff]  ;;  %v2697_v4 = vld [vmem:[#allocation3_spill] sm:$0xff] }
 0x236   :  { %653 = vmatpush.msrb.mxu2 %v1825_v62  ;;  %633 = vmatpush.msrb.mxu1 %v1581_v57 }
 0x237   :  { %670 = vmatpush.msrb.mxu3 %v1230_v6  ;;  %691 = vmatpush.msrb.mxu0 %v1223_v5  ;;  %v2698_v5 = vld [vmem:[#allocation6_spill] sm:$0xff]  ;;  %v2699_v6 = vld [vmem:[#allocation19_spill] sm:$0xff] }
 0x238   :  { %654 = vmatpush.msrb.mxu2 %v1831_v60  ;;  %634 = vmatpush.msrb.mxu1 %v1593_v59 }
 0x239   :  { %671 = vmatpush.msrb.mxu3 %v1243_v8  ;;  %692 = vmatpush.msrb.mxu0 %v1236_v7  ;;  %v2700_v7 = vld [vmem:[#allocation5_spill] sm:$0xff]  ;;  %v2701_v8 = vld [vmem:[#allocation8_spill] sm:$0xff] }
 0x23a   :  { %655 = vmatpush.msrb.mxu2 %v1837_v56  ;;  %635 = vmatpush.msrb.mxu1 %v1605_v61 }
 0x23b   :  { %672 = vmatpush.msrb.mxu3 %v1257_v10  ;;  %693 = vmatpush.msrb.mxu0 %v1250_v9  ;;  %v2702_v9 = vld [vmem:[#allocation20_spill] sm:$0xff]  ;;  %v2703_v10 = vld [vmem:[#allocation7_spill] sm:$0xff] }
 0x23c   :  { %656 = vmatpush.msrb.mxu2 %v1843_v32  ;;  %636 = vmatpush.msrb.mxu1 %v1617_v63 }
 0x23d   :  { %673 = vmatpush.msrb.mxu3 %v1271_v12  ;;  %694 = vmatpush.msrb.mxu0 %v1264_v11  ;;  %v2704_v11 = vld [vmem:[#allocation10_spill] sm:$0xff]  ;;  %v2705_v12 = vld [vmem:[#allocation21_spill] sm:$0xff] }
 0x23e   :  { %657 = vmatpush.msrb.mxu2 %v1849_v54  ;;  %637 = vmatpush.msrb.mxu1 %v1629_v1 }
 0x23f   :  { %674 = vmatpush.msrb.mxu3 %v1285_v14  ;;  %695 = vmatpush.msrb.mxu0 %v1278_v13  ;;  %v2706_v13 = vld [vmem:[#allocation9_spill] sm:$0xff]  ;;  %v2707_v14 = vld [vmem:[#allocation12_spill] sm:$0xff] }
 0x240   :  { %658 = vmatpush.msrb.mxu2 %v1855_v47  ;;  %638 = vmatpush.msrb.mxu1 %v1641_v49 }
 0x241   :  { %675 = vmatpush.msrb.mxu3 %v1299_v16  ;;  %696 = vmatpush.msrb.mxu0 %v1292_v15  ;;  %v2708_v15 = vld [vmem:[#allocation22_spill] sm:$0xff]  ;;  %v2709_v16 = vld [vmem:[#allocation11_spill] sm:$0xff] }
 0x242   :  { %659 = vmatpush.msrb.mxu2 %v1860_v45  ;;  %639 = vmatpush.msrb.mxu1 %v1655_v34 }
 0x243   :  { %676 = vmatpush.msrb.mxu3 %v1313_v18  ;;  %697 = vmatpush.msrb.mxu0 %v1306_v17  ;;  %v2710_v17 = vld [vmem:[#allocation14_spill] sm:$0xff]  ;;  %v2711_v18 = vld [vmem:[#allocation23_spill] sm:$0xff] }
 0x244   :  { %660 = vmatpush.msrb.mxu2 %v2665_v28  ;;  %640 = vmatpush.msrb.mxu1 %v2664_v26 }
 0x245   :  { %677 = vmatpush.msrb.mxu3 %v2695_v2  ;;  %698 = vmatpush.msrb.mxu0 %v2697_v4  ;;  %v2723_v2 = vld [vmem:[#allocation31_spill] sm:$0xff] }
 0x246   :  { %710 = vmatpush.msra.mxu1 %v2696_v3  ;;  %v2724_v3 = vld [vmem:[#allocation33_spill] sm:$0xff]  ;;  %v2725_v4 = vld [vmem:[#allocation35_spill] sm:$0xff] }
 0x247   :  { %678 = vmatpush.msrb.mxu3 %v2698_v5  ;;  %699 = vmatpush.msrb.mxu0 %v2700_v7  ;;  %v107_v5 = vadd.f32 %v1524_v48, %v2725_v4  ;;  %v2190_v4 = vld [vmem:[%s2545_s5 + $0x60] sm:$0xff] }
 0x248   :  { %711 = vmatpush.msra.mxu1 %v2699_v6 }
 0x249   :  { %679 = vmatpush.msrb.mxu3 %v2701_v8  ;;  %700 = vmatpush.msrb.mxu0 %v2703_v10 }
 0x24a   :  { %712 = vmatpush.msra.mxu1 %v2702_v9 }
 0x24b   :  { %680 = vmatpush.msrb.mxu3 %v2704_v11  ;;  %701 = vmatpush.msrb.mxu0 %v2706_v13 }
 0x24c   :  { %713 = vmatpush.msra.mxu1 %v2705_v12 }
 0x24d   :  { %681 = vmatpush.msrb.mxu3 %v2707_v14  ;;  %702 = vmatpush.msrb.mxu0 %v2709_v16  ;;  %v2145_v16 = vld [vmem:[%s2545_s5 + $0x78] sm:$0xff] }
 0x24e   :  { %714 = vmatpush.msra.mxu1 %v2708_v15  ;;  %v2134_v15 = vld [vmem:[%s2543_s4 + $0x50] sm:$0xff] }
 0x24f   :  { %682 = vmatpush.msrb.mxu3 %v2710_v17  ;;  %703 = vmatpush.msrb.mxu0 %v2712_v23  ;;  %v2151_v17 = vld [vmem:[%s2543_s4 + $0x48] sm:$0xff]  ;;  %v2166_v23 = vld [vmem:[%s2543_s4 + $0x40] sm:$0xff] }
 0x250   :  { %715 = vmatpush.msra.mxu1 %v2711_v18  ;;  %v2160_v18 = vld [vmem:[%s2545_s5 + $0x70] sm:$0xff] }
 0x251   :  { %683 = vmatpush.msrb.mxu3 %v2713_v24  ;;  %704 = vmatpush.msrb.mxu0 %v2715_v39  ;;  %v1090_v24 = vld [vmem:[%s2542_s2 + $0x38] sm:$0xff] }
 0x252   :  { %716 = vmatpush.msra.mxu1 %v2714_v50  ;;  %v2175_v50 = vld [vmem:[%s2545_s5 + $0x68] sm:$0xff]  ;;  %v2181_v39 = vld [vmem:[%s2543_s4 + $0x38] sm:$0xff] }
 0x253   :  { %705 = vmatpush.msrb.mxu0 %v2717_v41  ;;  %v1093_v41 = vld [vmem:[%s2542_s2 + $0x30] sm:$0xff] }
 0x254   :  { %717 = vmatpush.msra.mxu1 %v2716_v36 }
 0x256   :  { %718 = vmatpush.msra.mxu1 %v2718_v35 }
 0x258   :  { %719 = vmatpush.msra.mxu1 %v2719_v20 }
 0x25a   :  { %720 = vmatpush.msra.mxu1 %v2720_v22 }
 0x25c   :  { %721 = vmatpush.msra.mxu1 %v2721_v19 }
 0x25e   :  { %722 = vmatpush.msra.mxu1 %v2722_v21 }
 0x260   :  { %723 = vmatpush.msra.mxu1 %v2723_v2 }
 0x262   :  { %724 = vmatpush.msra.mxu1 %v2689_v43 }
 0x264   :  { %725 = vmatpush.msra.mxu1 %v2724_v3 }
 0x2a2   :  { %v471_v6 = vpop.f32.mrf.mxu1 }
 0x2a3   :  { %v474_v7 = vadd.f32 %v471_v6, %v107_v5  ;;  %v2196_v5 = vld [vmem:[%s2543_s4 + $0x30] sm:$0xff]  ;;  %v1096_v6 = vld [vmem:[%s2542_s2 + $0x28] sm:$0xff] }
 0x2a5   :  { %1042 = vtanh.f32 %v474_v7  ;;  %v2205_v7 = vld [vmem:[%s2545_s5 + $0x58] sm:$0xff] }
 0x2a8   :  { %v493_v11 = vpop.f32.mrf.mxu2 }
 0x2a9   :  { %v494_v13 = vadd.f32 %v1716_v29, %v493_v11  ;;  %v2226_v11 = vld [vmem:[%s2543_s4 + $0x20] sm:$0xff] }
 0x2ab   :  { %v1043_v8 = vpop.eup %1042 }
 0x2ac   :  { %577 = vmatmul.f32.vlgmr.msra.gmra.mxu2 %v1043_v8  ;;  %599 = vmatmul.f32.vlgmr.msra.gmra.mxu3 %v1043_v8  ;;  %v2211_v8 = vld [vmem:[%s2543_s4 + $0x28] sm:$0xff] }
 0x2ad   :  { %732 = vmatpush.msra.mxu2 %v1445_v37  ;;  %752 = vmatpush.msra.mxu3 %v2661_v25 }
 0x2ae   :  { %v535_v9 = vpop.f32.mrf.mxu0 }
 0x2af   :  { %v536_v10 = vadd.f32 %v1875_v27, %v535_v9  ;;  %733 = vmatpush.msra.mxu2 %v1452_v38  ;;  %753 = vmatpush.msra.mxu3 %v2662_v30  ;;  %v1099_v9 = vld [vmem:[%s2542_s2 + $0x20] sm:$0xff] }
 0x2b0   :  { %v555_v12 = vpop.f32.mrf.mxu1 }
 0x2b1   :  { %v558_v48 = vadd.f32 %v555_v12, %v536_v10  ;;  %734 = vmatpush.msra.mxu2 %v1463_v40  ;;  %754 = vmatpush.msra.mxu3 %v2663_v33  ;;  %v2220_v10 = vld [vmem:[%s2545_s5 + $0x50] sm:$0xff]  ;;  %v1102_v12 = vld [vmem:[%s2542_s2 + $0x18] sm:$0xff] }
 0x2b3   :  { %1044 = vtanh.f32 %v558_v48  ;;  %735 = vmatpush.msra.mxu2 %v1477_v42  ;;  %755 = vmatpush.msra.mxu3 %v1696_v31  ;;  %v1072_v42 = vld [vmem:[%s2542_s2 + $0x78] sm:$0xff]  ;;  %v2235_v48 = vld [vmem:[%s2545_s5 + $0x48] sm:$0xff] }
 0x2b4   :  { %v513_v37 = vpop.f32.mrf.mxu3 }
 0x2b5   :  { %v516_v14 = vadd.f32 %v513_v37, %v494_v13  ;;  %736 = vmatpush.msra.mxu2 %v1491_v44  ;;  %756 = vmatpush.msra.mxu3 %v1797_v52  ;;  %v2079_v44 = vld [vmem:[%s2543_s4 + $0x78] sm:$0xff]  ;;  %v1105_v37 = vld [vmem:[%s2542_s2 + $0x10] sm:$0xff] }
 0x2b6   :  { %v2241_v13 = vld [vmem:[%s2543_s4 + $0x18] sm:$0xff] }
 0x2b7   :  { %1046 = vtanh.f32 %v516_v14  ;;  %737 = vmatpush.msra.mxu2 %v1504_v46  ;;  %757 = vmatpush.msra.mxu3 %v1803_v58  ;;  %v1074_v46 = vld [vmem:[%s2542_s2 + $0x70] sm:$0xff] }
 0x2b8   :  { %v2251_v14 = vld [vmem:[%s2543_s4 + $0x10] sm:$0xff] }
 0x2b9   :  { %v1045_v38 = vpop.eup %1044  ;;  %738 = vmatpush.msra.mxu2 %v1557_v53  ;;  %758 = vmatpush.msra.mxu3 %v1808_v0  ;;  %v2090_v53 = vld [vmem:[%s2543_s4 + $0x70] sm:$0xff] }
 0x2ba   :  { %661 = vmatmul.f32.vlgmr.msrb.gmra.mxu2 %v1045_v38  ;;  %v1107_v38 = vld [vmem:[%s2542_s2 + $0x8] sm:$0xff] }
 0x2bb   :  { %739 = vmatpush.msra.mxu2 %v1569_v55  ;;  %759 = vmatpush.msra.mxu3 %v1815_v51  ;;  %v1076_v55 = vld [vmem:[%s2542_s2 + $0x68] sm:$0xff] }
 0x2bd   :  { %v1047_v40 = vpop.eup %1046  ;;  %740 = vmatpush.msra.mxu2 %v1581_v57  ;;  %760 = vmatpush.msra.mxu3 %v1825_v62  ;;  %v2101_v57 = vld [vmem:[%s2543_s4 + $0x68] sm:$0xff] }
 0x2be   :  { %619 = vmatmul.f32.vlgmr.msra.gmra.mxu0 %v1047_v40  ;;  %641 = vmatmul.f32.vlgmr.msrb.gmra.mxu1 %v1047_v40  ;;  %v2261_v40 = vld [vmem:[%s2543_s4 + $0x8] sm:$0xff] }
 0x2bf   :  { %741 = vmatpush.msra.mxu2 %v1593_v59  ;;  %761 = vmatpush.msra.mxu3 %v1831_v60  ;;  %v1078_v59 = vld [vmem:[%s2542_s2 + $0x60] sm:$0xff] }
 0x2c0   :  { %775 = vmatpush.msra.mxu0 %v1072_v42  ;;  %797 = vmatpush.msrb.mxu1 %v2079_v44  ;;  %v2271_v42 = vld [vmem:[%s2543_s4] sm:$0xff] }
 0x2c1   :  { %742 = vmatpush.msra.mxu2 %v1605_v61  ;;  %762 = vmatpush.msra.mxu3 %v1837_v56  ;;  %v2112_v61 = vld [vmem:[%s2543_s4 + $0x60] sm:$0xff] }
 0x2c2   :  { %776 = vmatpush.msra.mxu0 %v1074_v46  ;;  %798 = vmatpush.msrb.mxu1 %v2090_v53 }
 0x2c3   :  { %743 = vmatpush.msra.mxu2 %v1617_v63  ;;  %763 = vmatpush.msra.mxu3 %v1843_v32  ;;  %v1080_v63 = vld [vmem:[%s2542_s2 + $0x58] sm:$0xff] }
 0x2c4   :  { %777 = vmatpush.msra.mxu0 %v1076_v55  ;;  %799 = vmatpush.msrb.mxu1 %v2101_v57 }
 0x2c5   :  { %744 = vmatpush.msra.mxu2 %v1629_v1  ;;  %764 = vmatpush.msra.mxu3 %v1849_v54  ;;  %v2123_v1 = vld [vmem:[%s2543_s4 + $0x58] sm:$0xff] }
 0x2c6   :  { %778 = vmatpush.msra.mxu0 %v1078_v59  ;;  %800 = vmatpush.msrb.mxu1 %v2112_v61 }
 0x2c7   :  { %745 = vmatpush.msra.mxu2 %v1641_v49  ;;  %765 = vmatpush.msra.mxu3 %v1855_v47  ;;  %v1082_v49 = vld [vmem:[%s2542_s2 + $0x50] sm:$0xff] }
 0x2c8   :  { %779 = vmatpush.msra.mxu0 %v1080_v63  ;;  %801 = vmatpush.msrb.mxu1 %v2123_v1 }
 0x2c9   :  { %746 = vmatpush.msra.mxu2 %v1655_v34  ;;  %766 = vmatpush.msra.mxu3 %v1860_v45  ;;  %v1084_v34 = vld [vmem:[%s2542_s2 + $0x48] sm:$0xff] }
 0x2ca   :  { %780 = vmatpush.msra.mxu0 %v1082_v49  ;;  %802 = vmatpush.msrb.mxu1 %v2134_v15 }
 0x2cb   :  { %747 = vmatpush.msra.mxu2 %v2664_v26  ;;  %767 = vmatpush.msra.mxu3 %v2665_v28  ;;  %v1087_v26 = vld [vmem:[%s2542_s2 + $0x40] sm:$0xff] }
 0x2cc   :  { %781 = vmatpush.msra.mxu0 %v1084_v34  ;;  %803 = vmatpush.msrb.mxu1 %v2151_v17  ;;  %v2299_v34 = vld [vmem:[%s2546_s7 + $0x70] sm:$0xff] }
 0x2cd   :  { %817 = vmatpush.msrb.mxu2 %v2145_v16 }
 0x2ce   :  { %782 = vmatpush.msra.mxu0 %v1087_v26  ;;  %804 = vmatpush.msrb.mxu1 %v2166_v23 }
 0x2cf   :  { %818 = vmatpush.msrb.mxu2 %v2160_v18 }
 0x2d0   :  { %783 = vmatpush.msra.mxu0 %v1090_v24  ;;  %805 = vmatpush.msrb.mxu1 %v2181_v39  ;;  %v2313_v24 = vld [vmem:[%s2546_s7 + $0x60] sm:$0xff] }
 0x2d1   :  { %819 = vmatpush.msrb.mxu2 %v2175_v50 }
 0x2d2   :  { %784 = vmatpush.msra.mxu0 %v1093_v41  ;;  %806 = vmatpush.msrb.mxu1 %v2196_v5  ;;  %v2327_v41 = vld [vmem:[%s2546_s7 + $0x50] sm:$0xff] }
 0x2d3   :  { %820 = vmatpush.msrb.mxu2 %v2190_v4 }
 0x2d4   :  { %785 = vmatpush.msra.mxu0 %v1096_v6  ;;  %807 = vmatpush.msrb.mxu1 %v2211_v8  ;;  %v2334_v6 = vld [vmem:[%s2546_s7 + $0x48] sm:$0xff] }
 0x2d5   :  { %821 = vmatpush.msrb.mxu2 %v2205_v7 }
 0x2d6   :  { %786 = vmatpush.msra.mxu0 %v1099_v9  ;;  %808 = vmatpush.msrb.mxu1 %v2226_v11  ;;  %v2342_v9 = vld [vmem:[%s2546_s7 + $0x40] sm:$0xff] }
 0x2d7   :  { %822 = vmatpush.msrb.mxu2 %v2220_v10 }
 0x2d8   :  { %787 = vmatpush.msra.mxu0 %v1102_v12  ;;  %809 = vmatpush.msrb.mxu1 %v2241_v13  ;;  %v2351_v12 = vld [vmem:[%s2546_s7 + $0x38] sm:$0xff] }
 0x2d9   :  { %823 = vmatpush.msrb.mxu2 %v2235_v48 }
 0x2da   :  { %788 = vmatpush.msra.mxu0 %v1105_v37  ;;  %810 = vmatpush.msrb.mxu1 %v2251_v14 }
 0x2db   :  { %824 = vmatpush.msrb.mxu2 %v2716_v36  ;;  %v1109_v36 = vld [vmem:[%s2542_s2] sm:$0xff] }
 0x2dc   :  { %789 = vmatpush.msra.mxu0 %v1107_v38  ;;  %811 = vmatpush.msrb.mxu1 %v2261_v40 }
 0x2dd   :  { %825 = vmatpush.msrb.mxu2 %v2718_v35  ;;  %v2283_v35 = vld [vmem:[%s2544_s3] ss:$0 sm:$0xff] }
 0x2de   :  { %790 = vmatpush.msra.mxu0 %v1109_v36  ;;  %812 = vmatpush.msrb.mxu1 %v2271_v42 }
 0x2df   :  { %826 = vmatpush.msrb.mxu2 %v2719_v20  ;;  %v2726_v20 = vld [vmem:[#allocation36_spill] sm:$0xff] }
 0x2e0   :  { %v110_v46 = vadd.f32 %v2283_v35, %v2726_v20  ;;  %v1138_v20 = vld [vmem:[%s2548_s8 + $0x78] sm:$0xff] }
 0x2e1   :  { %827 = vmatpush.msrb.mxu2 %v2720_v22 }
 0x2e3   :  { %828 = vmatpush.msrb.mxu2 %v2721_v19 }
 0x2e5   :  { %829 = vmatpush.msrb.mxu2 %v2722_v21 }
 0x2e7   :  { %830 = vmatpush.msrb.mxu2 %v2723_v2 }
 0x2e9   :  { %831 = vmatpush.msrb.mxu2 %v2689_v43  ;;  %v2291_v43 = vld [vmem:[%s2546_s7 + $0x78] sm:$0xff] }
 0x2eb   :  { %832 = vmatpush.msrb.mxu2 %v2724_v3 }
 0x32f   :  { %v578_v55 = vpop.f32.mrf.mxu2  ;;  %v600_v19 = vpop.f32.mrf.mxu3 }
 0x330   :  { %v581_v22 = vadd.f32 %v578_v55, %v110_v46  ;;  %v601_v21 = vadd.f32 %v1716_v29, %v600_v19 }
 0x332   :  { %1048 = vtanh.f32 %v581_v22  ;;  %v1139_v22 = vld [vmem:[%s2548_s8 + $0x70] sm:$0xff] }
 0x338   :  { %v1049_v59 = vpop.eup %1048 }
 0x339   :  { %684 = vmatmul.f32.vlgmr.msrb.gmra.mxu3 %v1049_v59  ;;  %706 = vmatmul.f32.vlgmr.msrb.gmra.mxu0 %v1049_v59 }
 0x33a   :  { %839 = vmatpush.msrb.mxu3 %v2291_v43  ;;  %859 = vmatpush.msrb.mxu0 %v2661_v25  ;;  %v2306_v25 = vld [vmem:[%s2546_s7 + $0x68] sm:$0xff] }
 0x33b   :  { %v620_v2 = vpop.f32.mrf.mxu0  ;;  %v642_v3 = vpop.f32.mrf.mxu1 }
 0x33c   :  { %v623_v63 = vadd.f32 %v620_v2, %v601_v21  ;;  %v643_v49 = vadd.f32 %v1875_v27, %v642_v3  ;;  %840 = vmatpush.msrb.mxu3 %v2299_v34  ;;  %860 = vmatpush.msrb.mxu0 %v2662_v30  ;;  %v2320_v30 = vld [vmem:[%s2546_s7 + $0x58] sm:$0xff]  ;;  %v1140_v2 = vld [vmem:[%s2548_s8 + $0x68] sm:$0xff] }
 0x33d   :  { %v662_v29 = vpop.f32.mrf.mxu2 }
 0x33e   :  { %1050 = vtanh.f32 %v623_v63  ;;  %v665_v26 = vadd.f32 %v662_v29, %v643_v49  ;;  %841 = vmatpush.msrb.mxu3 %v2306_v25  ;;  %861 = vmatpush.msrb.mxu0 %v2663_v33 }
 0x340   :  { %1052 = vtanh.f32 %v665_v26  ;;  %842 = vmatpush.msrb.mxu3 %v2313_v24  ;;  %862 = vmatpush.msrb.mxu0 %v1696_v31 }
 0x342   :  { %843 = vmatpush.msrb.mxu3 %v2320_v30  ;;  %863 = vmatpush.msrb.mxu0 %v1797_v52 }
 0x344   :  { %v1051_v33 = vpop.eup %1050  ;;  %844 = vmatpush.msrb.mxu3 %v2327_v41  ;;  %864 = vmatpush.msrb.mxu0 %v1803_v58 }
 0x345   :  { %726 = vmatmul.f32.vlgmr.msra.gmra.mxu1 %v1051_v33  ;;  %748 = vmatmul.f32.vlgmr.msra.gmra.mxu2 %v1051_v33 }
 0x346   :  { %v1053_v31 = vpop.eup %1052  ;;  %845 = vmatpush.msrb.mxu3 %v2334_v6  ;;  %865 = vmatpush.msrb.mxu0 %v1808_v0 }
 0x347   :  { %768 = vmatmul.f32.vlgmr.msra.gmra.mxu3 %v1053_v31  ;;  %881 = vmatpush.msra.mxu1 %v2079_v44  ;;  %v2360_v44 = vld [vmem:[%s2546_s7 + $0x30] sm:$0xff] }
 0x348   :  { %846 = vmatpush.msrb.mxu3 %v2342_v9  ;;  %866 = vmatpush.msrb.mxu0 %v1815_v51 }
 0x349   :  { %882 = vmatpush.msra.mxu1 %v2090_v53  ;;  %901 = vmatpush.msra.mxu2 %v2145_v16  ;;  %v2369_v53 = vld [vmem:[%s2546_s7 + $0x28] sm:$0xff]  ;;  %v1127_v16 = vld [vmem:[%s2545_s5 + $0x40] sm:$0xff] }
 0x34a   :  { %847 = vmatpush.msrb.mxu3 %v2351_v12  ;;  %867 = vmatpush.msrb.mxu0 %v1825_v62 }
 0x34b   :  { %883 = vmatpush.msra.mxu1 %v2101_v57  ;;  %902 = vmatpush.msra.mxu2 %v2160_v18  ;;  %v2378_v57 = vld [vmem:[%s2546_s7 + $0x20] sm:$0xff]  ;;  %v1129_v18 = vld [vmem:[%s2545_s5 + $0x38] sm:$0xff] }
 0x34c   :  { %848 = vmatpush.msrb.mxu3 %v2360_v44  ;;  %868 = vmatpush.msrb.mxu0 %v1831_v60 }
 0x34d   :  { %884 = vmatpush.msra.mxu1 %v2112_v61  ;;  %903 = vmatpush.msra.mxu2 %v2175_v50  ;;  %v2387_v61 = vld [vmem:[%s2546_s7 + $0x18] sm:$0xff]  ;;  %v1131_v50 = vld [vmem:[%s2545_s5 + $0x28] sm:$0xff] }
 0x34e   :  { %849 = vmatpush.msrb.mxu3 %v2369_v53  ;;  %869 = vmatpush.msrb.mxu0 %v1837_v56 }
 0x34f   :  { %885 = vmatpush.msra.mxu1 %v2123_v1  ;;  %904 = vmatpush.msra.mxu2 %v2190_v4  ;;  %v2396_v1 = vld [vmem:[%s2546_s7 + $0x10] sm:$0xff]  ;;  %v1133_v4 = vld [vmem:[%s2545_s5 + $0x18] sm:$0xff] }
 0x350   :  { %850 = vmatpush.msrb.mxu3 %v2378_v57  ;;  %870 = vmatpush.msrb.mxu0 %v1843_v32 }
 0x351   :  { %886 = vmatpush.msra.mxu1 %v2134_v15  ;;  %905 = vmatpush.msra.mxu2 %v2205_v7  ;;  %v2405_v15 = vld [vmem:[%s2546_s7 + $0x8] sm:$0xff] }
 0x352   :  { %851 = vmatpush.msrb.mxu3 %v2387_v61  ;;  %871 = vmatpush.msrb.mxu0 %v1849_v54  ;;  %v1135_v7 = vld [vmem:[%s2545_s5 + $0x8] sm:$0xff] }
 0x353   :  { %887 = vmatpush.msra.mxu1 %v2151_v17  ;;  %906 = vmatpush.msra.mxu2 %v2220_v10  ;;  %v2416_v17 = vld [vmem:[%s2546_s7] sm:$0xff]  ;;  %v2727_v10 = vld [vmem:[#allocation37_spill] sm:$0xff] }
 0x354   :  { %852 = vmatpush.msrb.mxu3 %v2396_v1  ;;  %872 = vmatpush.msrb.mxu0 %v1855_v47 }
 0x355   :  { %888 = vmatpush.msra.mxu1 %v2166_v23  ;;  %907 = vmatpush.msra.mxu2 %v2235_v48  ;;  %v1130_v23 = vld [vmem:[%s2545_s5 + $0x30] sm:$0xff] }
 0x356   :  { %853 = vmatpush.msrb.mxu3 %v2405_v15  ;;  %873 = vmatpush.msrb.mxu0 %v1860_v45 }
 0x357   :  { %889 = vmatpush.msra.mxu1 %v2181_v39  ;;  %908 = vmatpush.msra.mxu2 %v1127_v16  ;;  %v1132_v39 = vld [vmem:[%s2545_s5 + $0x20] sm:$0xff] }
 0x358   :  { %854 = vmatpush.msrb.mxu3 %v2416_v17  ;;  %874 = vmatpush.msrb.mxu0 %v2665_v28 }
 0x359   :  { %890 = vmatpush.msra.mxu1 %v2196_v5  ;;  %909 = vmatpush.msra.mxu2 %v1129_v18  ;;  %v1134_v5 = vld [vmem:[%s2545_s5 + $0x10] sm:$0xff] }
 0x35a   :  { %923 = vmatpush.msra.mxu3 %v2291_v43 }
 0x35b   :  { %891 = vmatpush.msra.mxu1 %v2211_v8  ;;  %910 = vmatpush.msra.mxu2 %v1130_v23  ;;  %v1136_v8 = vld [vmem:[%s2545_s5] sm:$0xff] }
 0x35c   :  { %924 = vmatpush.msra.mxu3 %v2299_v34 }
 0x35d   :  { %892 = vmatpush.msra.mxu1 %v2226_v11  ;;  %911 = vmatpush.msra.mxu2 %v1131_v50  ;;  %v113_v11 = vadd.f32 %v2283_v35, %v2727_v10 }
 0x35e   :  { %925 = vmatpush.msra.mxu3 %v2306_v25 }
 0x35f   :  { %893 = vmatpush.msra.mxu1 %v2241_v13  ;;  %912 = vmatpush.msra.mxu2 %v1132_v39 }
 0x360   :  { %926 = vmatpush.msra.mxu3 %v2313_v24 }
 0x361   :  { %894 = vmatpush.msra.mxu1 %v2251_v14  ;;  %913 = vmatpush.msra.mxu2 %v1133_v4  ;;  %v2472_v14 = vld [vmem:[%s2547_s6] ss:$0 sm:$0xff] }
 0x362   :  { %927 = vmatpush.msra.mxu3 %v2320_v30 }
 0x363   :  { %895 = vmatpush.msra.mxu1 %v2261_v40  ;;  %914 = vmatpush.msra.mxu2 %v1134_v5 }
 0x364   :  { %928 = vmatpush.msra.mxu3 %v2327_v41 }
 0x365   :  { %896 = vmatpush.msra.mxu1 %v2271_v42  ;;  %915 = vmatpush.msra.mxu2 %v1135_v7 }
 0x366   :  { %929 = vmatpush.msra.mxu3 %v2334_v6 }
 0x367   :  { %916 = vmatpush.msra.mxu2 %v1136_v8 }
 0x368   :  { %930 = vmatpush.msra.mxu3 %v2342_v9 }
 0x36a   :  { %931 = vmatpush.msra.mxu3 %v2351_v12 }
 0x36c   :  { %932 = vmatpush.msra.mxu3 %v2360_v44 }
 0x36e   :  { %933 = vmatpush.msra.mxu3 %v2369_v53 }
 0x370   :  { %934 = vmatpush.msra.mxu3 %v2378_v57 }
 0x372   :  { %935 = vmatpush.msra.mxu3 %v2387_v61 }
 0x374   :  { %936 = vmatpush.msra.mxu3 %v2396_v1 }
 0x376   :  { %937 = vmatpush.msra.mxu3 %v2405_v15 }
 0x378   :  { %938 = vmatpush.msra.mxu3 %v2416_v17 }
 0x3b6   :  { %v707_v37 = vpop.f32.mrf.mxu0 }
 0x3b7   :  { %v708_v38 = vadd.f32 %v2472_v14, %v707_v37 }
 0x3bc   :  { %v685_v48 = vpop.f32.mrf.mxu3 }
 0x3bd   :  { %v688_v13 = vadd.f32 %v685_v48, %v113_v11 }
 0x3bf   :  { %1054 = vtanh.f32 %v688_v13 }
 0x3c2   :  { %v727_v40 = vpop.f32.mrf.mxu1 }
 0x3c3   :  { %v730_v36 = vadd.f32 %v727_v40, %v708_v38 }
 0x3c5   :  { %v1055_v42 = vpop.eup %1054  ;;  %1056 = vtanh.f32 %v730_v36 }
 0x3c6   :  { %791 = vmatmul.f32.vlgmr.msra.gmra.mxu0 %v1055_v42  ;;  %813 = vmatmul.f32.vlgmr.msrb.gmra.mxu1 %v1055_v42 }
 0x3c7   :  { %943 = vmatpush.msra.mxu0 %v1138_v20  ;;  %965 = vmatpush.msrb.mxu1 %v2291_v43  ;;  %v1141_v43 = vld [vmem:[%s2548_s8 + $0x60] sm:$0xff] }
 0x3c8   :  { %v749_v46 = vpop.f32.mrf.mxu2 }
 0x3c9   :  { %v750_v55 = vadd.f32 %v1875_v27, %v749_v46  ;;  %944 = vmatpush.msra.mxu0 %v1139_v22  ;;  %966 = vmatpush.msrb.mxu1 %v2299_v34 }
 0x3ca   :  { %v769_v19 = vpop.f32.mrf.mxu3 }
 0x3cb   :  { %v1057_v59 = vpop.eup %1056  ;;  %v772_v21 = vadd.f32 %v769_v19, %v750_v55  ;;  %945 = vmatpush.msra.mxu0 %v1140_v2  ;;  %967 = vmatpush.msrb.mxu1 %v2306_v25 }
 0x3cc   :  { %833 = vmatmul.f32.vlgmr.msrb.gmra.mxu2 %v1057_v59  ;;  %855 = vmatmul.f32.vlgmr.msrb.gmra.mxu3 %v1057_v59 }
 0x3cd   :  { %1058 = vtanh.f32 %v772_v21  ;;  %946 = vmatpush.msra.mxu0 %v1141_v43  ;;  %985 = vmatpush.msrb.mxu2 %v1138_v20 }
 0x3ce   :  { %968 = vmatpush.msrb.mxu1 %v2313_v24 }
 0x3cf   :  { %947 = vmatpush.msra.mxu0 %v1797_v52  ;;  %986 = vmatpush.msrb.mxu2 %v1139_v22 }
 0x3d0   :  { %969 = vmatpush.msrb.mxu1 %v2320_v30 }
 0x3d1   :  { %948 = vmatpush.msra.mxu0 %v1803_v58  ;;  %987 = vmatpush.msrb.mxu2 %v1140_v2 }
 0x3d2   :  { %970 = vmatpush.msrb.mxu1 %v2327_v41 }
 0x3d3   :  { %v1059_v3 = vpop.eup %1058  ;;  %949 = vmatpush.msra.mxu0 %v1808_v0  ;;  %988 = vmatpush.msrb.mxu2 %v1141_v43 }
 0x3d4   :  { %875 = vmatmul.f32.vlgmr.msrb.gmra.mxu0 %v1059_v3  ;;  %971 = vmatpush.msrb.mxu1 %v2334_v6 }
 0x3d5   :  { %950 = vmatpush.msra.mxu0 %v1815_v51  ;;  %989 = vmatpush.msrb.mxu2 %v1797_v52  ;;  %v2728_v52 = vld [vmem:[#allocation34_spill] sm:$0xff] }
 0x3d6   :  { %972 = vmatpush.msrb.mxu1 %v2342_v9 }
 0x3d7   :  { %951 = vmatpush.msra.mxu0 %v1825_v62  ;;  %990 = vmatpush.msrb.mxu2 %v1803_v58 }
 0x3d8   :  { %973 = vmatpush.msrb.mxu1 %v2351_v12  ;;  %v1142_v12 = vld [vmem:[%s2549_s9] ss:$0 sm:$0xff] }
 0x3d9   :  { %952 = vmatpush.msra.mxu0 %v1831_v60  ;;  %991 = vmatpush.msrb.mxu2 %v1808_v0 }
 0x3da   :  { %974 = vmatpush.msrb.mxu1 %v2360_v44 }
 0x3db   :  { %953 = vmatpush.msra.mxu0 %v1837_v56  ;;  %992 = vmatpush.msrb.mxu2 %v1815_v51 }
 0x3dc   :  { %975 = vmatpush.msrb.mxu1 %v2369_v53 }
 0x3dd   :  { %954 = vmatpush.msra.mxu0 %v1843_v32  ;;  %993 = vmatpush.msrb.mxu2 %v1825_v62 }
 0x3de   :  { %976 = vmatpush.msrb.mxu1 %v2378_v57 }
 0x3df   :  { %955 = vmatpush.msra.mxu0 %v1849_v54  ;;  %994 = vmatpush.msrb.mxu2 %v1831_v60 }
 0x3e0   :  { %977 = vmatpush.msrb.mxu1 %v2387_v61 }
 0x3e1   :  { %956 = vmatpush.msra.mxu0 %v1855_v47  ;;  %995 = vmatpush.msrb.mxu2 %v1837_v56  ;;  %v116_v56 = vadd.f32 %v2283_v35, %v2728_v52 }
 0x3e2   :  { %978 = vmatpush.msrb.mxu1 %v2396_v1 }
 0x3e3   :  { %957 = vmatpush.msra.mxu0 %v1860_v45  ;;  %996 = vmatpush.msrb.mxu2 %v1843_v32 }
 0x3e4   :  { %979 = vmatpush.msrb.mxu1 %v2405_v15 }
 0x3e5   :  { %958 = vmatpush.msra.mxu0 %v2665_v28  ;;  %997 = vmatpush.msrb.mxu2 %v1849_v54 }
 0x3e6   :  { %980 = vmatpush.msrb.mxu1 %v2416_v17 }
 0x3e7   :  { %998 = vmatpush.msrb.mxu2 %v1855_v47 }
 0x3e9   :  { %999 = vmatpush.msrb.mxu2 %v1860_v45 }
 0x3eb   :  { %1000 = vmatpush.msrb.mxu2 %v2665_v28 }
 0x443   :  { %v792_v58 = vpop.f32.mrf.mxu0  ;;  %v814_v62 = vpop.f32.mrf.mxu1 }
 0x444   :  { %v795_v60 = vadd.f32 %v792_v58, %v116_v56  ;;  %v815_v51 = vadd.f32 %v2472_v14, %v814_v62 }
 0x446   :  { %1060 = vtanh.f32 %v795_v60 }
 0x44c   :  { %v1061_v0 = vpop.eup %1060 }
 0x44d   :  { %897 = vmatmul.f32.vlgmr.msra.gmra.mxu1 %v1061_v0 }
 0x44f   :  { %v834_v54 = vpop.f32.mrf.mxu2  ;;  %v856_v32 = vpop.f32.mrf.mxu3 }
 0x450   :  { %v837_v63 = vadd.f32 %v834_v54, %v815_v51  ;;  %v857_v47 = vadd.f32 %v1875_v27, %v856_v32 }
 0x451   :  { %v876_v49 = vpop.f32.mrf.mxu0 }
 0x452   :  { %1062 = vtanh.f32 %v837_v63  ;;  %v879_v45 = vadd.f32 %v876_v49, %v857_v47 }
 0x454   :  { %1064 = vtanh.f32 %v879_v45 }
 0x458   :  { %v1063_v28 = vpop.eup %1062 }
 0x459   :  { %917 = vmatmul.f32.vlgmr.msra.gmra.mxu2 %v1063_v28  ;;  %939 = vmatmul.f32.vlgmr.msra.gmra.mxu3 %v1063_v28 }
 0x45a   :  { %v1065_v35 = vpop.eup %1064 }
 0x45b   :  { %959 = vmatmul.f32.vlgmr.msra.gmra.mxu0 %v1065_v35 }
 0x4ca   :  { %v898_v34 = vpop.f32.mrf.mxu1 }
 0x4cb   :  { %v899_v29 = vadd.f32 %v2472_v14, %v898_v34 }
 0x4d8   :  { %v960_v33 = vpop.f32.mrf.mxu0 }
 0x4dc   :  { %v918_v26 = vpop.f32.mrf.mxu2  ;;  %v940_v25 = vpop.f32.mrf.mxu3 }
 0x4dd   :  { %v921_v24 = vadd.f32 %v918_v26, %v899_v29  ;;  %v941_v30 = vadd.f32 %v1875_v27, %v940_v25 }
 0x4df   :  { %1066 = vtanh.f32 %v921_v24  ;;  %v963_v41 = vadd.f32 %v960_v33, %v941_v30 }
 0x4e1   :  { %1068 = vtanh.f32 %v963_v41 }
 0x4e5   :  { %v1067_v31 = vpop.eup %1066 }
 0x4e6   :  { %981 = vmatmul.f32.vlgmr.msrb.gmra.mxu1 %v1067_v31 }
 0x4e7   :  { %v1069_v6 = vpop.eup %1068 }
 0x4e8   :  { %1001 = vmatmul.f32.vlgmr.msrb.gmra.mxu2 %v1069_v6 }
 0x563   :  { %v982_v9 = vpop.f32.mrf.mxu1 }
 0x564   :  { %v983_v44 = vadd.f32 %v1142_v12, %v982_v9 }
 0x56b   :  { %v1002_v53 = vpop.f32.mrf.mxu2 }
 0x56c   :  { %v1005_v57 = vadd.f32 %v1002_v53, %v983_v44 }
 0x56e   :  { %1070 = vtanh.f32 %v1005_v57 }
 0x574   :  { %v1071_v61 = vpop.eup %1070 }
 0x575   :  { %1007 = vst [vmem:[%s2550_s10] sm:$0xff] %v1071_v61 }

</bundles_post_ra>
